<compile_context>
chip_gen: v5e
topology: v5e:2x2
jax: 0.10.0
libtpu: 0.0.40
codegen_flags: <defaults>
</compile_context>

<pallas_src>
import math

import jax
import jax.numpy as jnp
from jax import lax
from jax.experimental import pallas as pl
from jax.experimental.pallas import tpu as pltpu


# ---------------------------------------------------------------------------
# Per-generation VMEM budget (review: do not hard-code 48 MiB on 64 MiB/TC v7x).
# ---------------------------------------------------------------------------
def _vmem_limit_bytes(T, F, itemsize):
    need = (
        6 * 2 * T * F * itemsize        # 3 inputs + 3 outputs, double-buffered blocks
        + 6 * F * F * 4 + 6 * F * 4     # resident weights + biases (f32)
        + 2 * T * F * 4                 # resident cos_ext / sin_ext
        + 2 * T * F * 4                 # q / ctx scratch
        + 2 * T * T * 4                 # per-head score-tile headroom
    )
    try:
        cap = int(getattr(pltpu.get_tpu_info(), "vmem_capacity_bytes", 128 << 20))
    except Exception:  # pragma: no cover - interpret mode / old jax
        cap = 128 << 20
    return int(min(max(2 * need, 32 << 20), int(cap * 0.9)))


# ---------------------------------------------------------------------------
# Wrapper + kernel (one batch element per grid step; heads unrolled in-kernel).
# ---------------------------------------------------------------------------
def rope_mha_forward(query, key, value, cos, sin, params, *, n_head, mxu_dtype=None):
    B, T1, F = query.shape
    _, T2, _ = key.shape
    assert T1 == T2, "one pos_emb is applied to both q and k (self-attention)"
    d_k = F // n_head
    half = d_k // 2
    assert n_head * d_k == F and d_k % 2 == 0
    scale = 1.0 / math.sqrt(d_k)
    dtype = query.dtype
    mm_dt = jnp.float32 if mxu_dtype is None else mxu_dtype

    # ---- wrapper-side precomputes -----------------------------------------
    # Per-head half-swap permutation: rot(q)[..., i] = q[..., perm[i]].  Folding it into
    # the projection weights (W_rot = W[:, perm]) makes RoPE purely elementwise in-kernel.
    base = jnp.arange(d_k, dtype=jnp.int32)
    swapped = jnp.concatenate([base[half:], base[:half]])
    perm = (jnp.arange(n_head, dtype=jnp.int32)[:, None] * d_k
            + swapped[None, :]).reshape(-1)

    wq_s = (params["wq"] * scale).astype(jnp.float32)   # fold 1/sqrt(d_k) into q side
    bq_s = (params["bq"] * scale).astype(jnp.float32)
    wqr, bqr = wq_s[:, perm], bq_s[:, perm]
    wk, bk = params["wk"].astype(jnp.float32), params["bk"].astype(jnp.float32)
    wkr, bkr = wk[:, perm], bk[:, perm]
    wv, bv = params["wv"].astype(jnp.float32), params["bv"].astype(jnp.float32)
    wo, bo = params["wo"].astype(jnp.float32), params["bo"].astype(jnp.float32)

    # Lane-dense, full-width RoPE coefficient tables (sign baked into sin_ext):
    #   per head: cos_ext = [cos | cos], sin_ext = [-sin | +sin].
    cos_ext = jnp.tile(jnp.concatenate([cos, cos], axis=-1), (1, n_head)).astype(jnp.float32)
    sin_ext = jnp.tile(jnp.concatenate([-sin, sin], axis=-1), (1, n_head)).astype(jnp.float32)

    # ---- kernel -------------------------------------------------------------
    def kernel(xq_ref, xk_ref, xv_ref, cos_ref, sin_ref,
               wq_ref, bq_ref, wqr_ref, bqr_ref,
               wk_ref, bk_ref, wkr_ref, bkr_ref,
               wv_ref, bv_ref, wo_ref, bo_ref,
               out_ref, kc_ref, vc_ref,
               q_s, ctx_s):
        f32 = jnp.float32
        xq = xq_ref[0]                       # (T1, F)
        xk = xk_ref[0]                       # (T2, F)
        xv = xv_ref[0]                       # (T2, F)
        cos_t = cos_ref[...]                 # (T, F) lane-dense
        sin_t = sin_ref[...]

        # Full-width projections (MXU-native N = K = F), RoPE applied elementwise.
        q = jnp.dot(xq, wq_ref[...], preferred_element_type=f32) + bq_ref[...]
        qr = jnp.dot(xq, wqr_ref[...], preferred_element_type=f32) + bqr_ref[...]
        q_s[...] = q * cos_t + qr * sin_t    # = rope(q) / sqrt(d_k), all heads

        k = jnp.dot(xk, wk_ref[...], preferred_element_type=f32) + bk_ref[...]
        kr = jnp.dot(xk, wkr_ref[...], preferred_element_type=f32) + bkr_ref[...]
        kc_ref[0] = (k * cos_t + kr * sin_t).astype(kc_ref.dtype)   # lane-dense cache write

        v = jnp.dot(xv, wv_ref[...], preferred_element_type=f32) + bv_ref[...]
        vc_ref[0] = v.astype(vc_ref.dtype)                           # lane-dense cache write

        # Per-head attention; operands live in VMEM (q scratch / cache output blocks),
        # sliced with static lane offsets.  Dropout rate is 0.0 -> identity.
        for h in range(n_head):
            s0 = h * d_k
            q_h = q_s[:, s0:s0 + d_k].astype(mm_dt)             # (T1, d_k), pre-scaled
            k_h = kc_ref[0, :, s0:s0 + d_k].astype(mm_dt)       # (T2, d_k), rope'd
            v_h = vc_ref[0, :, s0:s0 + d_k].astype(mm_dt)       # (T2, d_k)

            s = lax.dot_general(q_h, k_h, (((1,), (1,)), ((), ())),
                                preferred_element_type=f32)      # (T1, T2)
            m = jnp.max(s, axis=-1, keepdims=True)
            p = jnp.exp(s - m)
            l = jnp.sum(p, axis=-1, keepdims=True)
            ctx = jnp.dot(p.astype(mm_dt), v_h, preferred_element_type=f32)  # (T1, d_k)
            inv = pl.reciprocal(l, approx=True)                  # EUP slot
            inv = inv * (2.0 - l * inv)                          # one Newton step
            ctx_s[:, s0:s0 + d_k] = ctx * inv                    # post-matmul normalize

        # Single fused output projection over all heads: (T1, F) @ (F, F).
        out = jnp.dot(ctx_s[...], wo_ref[...], preferred_element_type=f32) + bo_ref[...]
        out_ref[0] = out.astype(out_ref.dtype)

    # ---- specs --------------------------------------------------------------
    batched = lambda T: pl.BlockSpec((1, T, F), lambda b: (b, 0, 0))
    resident_2d = lambda r, c: pl.BlockSpec((r, c), lambda b: (0, 0))

    grid_spec = pltpu.PrefetchScalarGridSpec(
        num_scalar_prefetch=0,
        grid=(B,),
        in_specs=[
            batched(T1),                 # query
            batched(T2),                 # key
            batched(T2),                 # value
            resident_2d(T1, F),          # cos_ext   (resident)
            resident_2d(T1, F),          # sin_ext   (resident)
            resident_2d(F, F),           # wq (scaled)
            resident_2d(1, F),           # bq (scaled)
            resident_2d(F, F),           # wq_rot
            resident_2d(1, F),           # bq_rot
            resident_2d(F, F),           # wk
            resident_2d(1, F),           # bk
            resident_2d(F, F),           # wk_rot
            resident_2d(1, F),           # bk_rot
            resident_2d(F, F),           # wv
            resident_2d(1, F),           # bv
            resident_2d(F, F),           # wo
            resident_2d(1, F),           # bo
        ],
        out_specs=[
            pl.BlockSpec((1, T1, F), lambda b: (b, 0, 0)),   # output
            pl.BlockSpec((1, T2, F), lambda b: (b, 0, 0)),   # k cache, (B,T2,F) lane-dense
            pl.BlockSpec((1, T2, F), lambda b: (b, 0, 0)),   # v cache, (B,T2,F) lane-dense
        ],
        scratch_shapes=[
            pltpu.VMEM((T1, F), jnp.float32),   # rope'd + scaled q, all heads
            pltpu.VMEM((T1, F), jnp.float32),   # per-head contexts
        ],
    )

    out, kc, vc = pl.pallas_call(
        kernel,
        out_shape=(
            jax.ShapeDtypeStruct((B, T1, F), dtype),
            jax.ShapeDtypeStruct((B, T2, F), dtype),
            jax.ShapeDtypeStruct((B, T2, F), dtype),
        ),
        grid_spec=grid_spec,
        compiler_params=pltpu.CompilerParams(
            dimension_semantics=("parallel",),
            vmem_limit_bytes=_vmem_limit_bytes(max(T1, T2), F,
                                               jnp.dtype(dtype).itemsize),
        ),
    )(query, key, value, cos_ext, sin_ext,
      wq_s, bq_s, wqr, bqr, wk, bk, wkr, bkr, wv, bv, wo, bo)

    # Zero-copy reshape to the module's head_first=False cache layout (B, T2, h, d_k).
    new_cache = (kc.reshape(B, T2, n_head, d_k), vc.reshape(B, T2, n_head, d_k))
    return out, new_cache


# ---------------------------------------------------------------------------
# Pure-JAX reference (mirrors the PyTorch forward) for a sanity check.
# ---------------------------------------------------------------------------
def rope_mha_reference(query, key, value, cos, sin, params, *, n_head):
    B, T1, F = query.shape
    T2 = key.shape[1]
    d_k = F // n_head
    half = d_k // 2

    q = (query @ params["wq"] + params["bq"]).reshape(B, T1, n_head, d_k)
    k = (key @ params["wk"] + params["bk"]).reshape(B, T2, n_head, d_k)
    v = (value @ params["wv"] + params["bv"]).reshape(B, T2, n_head, d_k)

    cs = cos[None, :, None, :]
    sn = sin[None, :, None, :]

    def rope(x):
        a, b = x[..., :half], x[..., half:]
        return jnp.concatenate([a * cs - b * sn, a * sn + b * cs], axis=-1)

    q, k = rope(q), rope(k)
    qh = q.transpose(0, 2, 1, 3)
    kh = k.transpose(0, 2, 1, 3)
    vh = v.transpose(0, 2, 1, 3)

    scores = jnp.einsum("bhtd,bhsd->bhts", qh, kh) / math.sqrt(d_k)
    attn = jax.nn.softmax(scores, axis=-1)
    ctx = jnp.einsum("bhts,bhsd->bhtd", attn, vh)
    ctx = ctx.transpose(0, 2, 1, 3).reshape(B, T1, n_head * d_k)
    out = ctx @ params["wo"] + params["bo"]
    return out, (k, v)


# ---------------------------------------------------------------------------
if __name__ == "__main__":
    # Small config consistent with the module: n_feat=32, n_head=4 -> d_k=8.
    B, T, F, H = 2, 8, 32, 4
    d_k = F // H

    key0 = jax.random.PRNGKey(0)
    keys = jax.random.split(key0, 12)

    def uinit(k, shape, fan_in):
        bound = 1.0 / math.sqrt(fan_in)
        return jax.random.uniform(k, shape, jnp.float32, -bound, bound)

    params = {
        "wq": uinit(keys[0], (F, F), F), "bq": uinit(keys[1], (1, F), F),
        "wk": uinit(keys[2], (F, F), F), "bk": uinit(keys[3], (1, F), F),
        "wv": uinit(keys[4], (F, F), F), "bv": uinit(keys[5], (1, F), F),
        "wo": uinit(keys[6], (F, F), F), "bo": uinit(keys[7], (1, F), F),
    }

    query = jax.random.normal(keys[8], (B, T, F), jnp.float32)
    key_in = jax.random.normal(keys[9], (B, T, F), jnp.float32)
    value = jax.random.normal(keys[10], (B, T, F), jnp.float32)

    # pos_emb (freqs_cis) as cos/sin of shape (T, d_k/2), rope theta = 10000.
    theta = 10000.0
    inv_freq = 1.0 / (theta ** (jnp.arange(0, d_k, 2, dtype=jnp.float32) / d_k))
    freqs = jnp.arange(T, dtype=jnp.float32)[:, None] * inv_freq[None, :]
    cos, sin = jnp.cos(freqs), jnp.sin(freqs)

    out, (k_cache, v_cache) = rope_mha_forward(
        query, key_in, value, cos, sin, params, n_head=H)
    out = jax.block_until_ready(out)

    ref_out, (ref_k, ref_v) = rope_mha_reference(
        query, key_in, value, cos, sin, params, n_head=H)

    assert jnp.allclose(out, ref_out, atol=1e-3, rtol=1e-3), "output mismatch"
    assert jnp.allclose(k_cache, ref_k, atol=1e-4, rtol=1e-4), "k cache mismatch"
    assert jnp.allclose(v_cache, ref_v, atol=1e-4, rtol=1e-4), "v cache mismatch"
    print("KERNEL_OK")
</pallas_src>

<mosaic_0001>
module attributes {stable_mosaic.version = 11 : i64} {
  func.func @kernel(%arg0: i32, %arg1: memref<1x8x32xf32, #tpu.memory_space<vmem>>, %arg2: memref<1x8x32xf32, #tpu.memory_space<vmem>>, %arg3: memref<1x8x32xf32, #tpu.memory_space<vmem>>, %arg4: memref<8x32xf32, #tpu.memory_space<vmem>>, %arg5: memref<8x32xf32, #tpu.memory_space<vmem>>, %arg6: memref<32x32xf32, #tpu.memory_space<vmem>>, %arg7: memref<1x32xf32, #tpu.memory_space<vmem>>, %arg8: memref<32x32xf32, #tpu.memory_space<vmem>>, %arg9: memref<1x32xf32, #tpu.memory_space<vmem>>, %arg10: memref<32x32xf32, #tpu.memory_space<vmem>>, %arg11: memref<1x32xf32, #tpu.memory_space<vmem>>, %arg12: memref<32x32xf32, #tpu.memory_space<vmem>>, %arg13: memref<1x32xf32, #tpu.memory_space<vmem>>, %arg14: memref<32x32xf32, #tpu.memory_space<vmem>>, %arg15: memref<1x32xf32, #tpu.memory_space<vmem>>, %arg16: memref<32x32xf32, #tpu.memory_space<vmem>>, %arg17: memref<1x32xf32, #tpu.memory_space<vmem>>, %arg18: memref<1x8x32xf32, #tpu.memory_space<vmem>>, %arg19: memref<1x8x32xf32, #tpu.memory_space<vmem>>, %arg20: memref<1x8x32xf32, #tpu.memory_space<vmem>>, %arg21: memref<8x32xf32, #tpu.memory_space<vmem>>, %arg22: memref<8x32xf32, #tpu.memory_space<vmem>>) attributes {dimension_semantics = [#tpu.dimension_semantics<parallel>], iteration_bounds = array<i64: 2>, scalar_prefetch = 0 : i64, scratch_operands = 2 : i64, tpu.core_type = #tpu.core_type<tc>, window_params = [{transform_indices = @transform_0, window_bounds = array<i64: 1, 8, 32>}, {transform_indices = @transform_1, window_bounds = array<i64: 1, 8, 32>}, {transform_indices = @transform_2, window_bounds = array<i64: 1, 8, 32>}, {pipeline_mode = #tpu.pipeline_mode<synchronous>, transform_indices = @transform_3, window_bounds = array<i64: 8, 32>}, {pipeline_mode = #tpu.pipeline_mode<synchronous>, transform_indices = @transform_4, window_bounds = array<i64: 8, 32>}, {pipeline_mode = #tpu.pipeline_mode<synchronous>, transform_indices = @transform_5, window_bounds = array<i64: 32, 32>}, {pipeline_mode = #tpu.pipeline_mode<synchronous>, transform_indices = @transform_6, window_bounds = array<i64: 1, 32>}, {pipeline_mode = #tpu.pipeline_mode<synchronous>, transform_indices = @transform_7, window_bounds = array<i64: 32, 32>}, {pipeline_mode = #tpu.pipeline_mode<synchronous>, transform_indices = @transform_8, window_bounds = array<i64: 1, 32>}, {pipeline_mode = #tpu.pipeline_mode<synchronous>, transform_indices = @transform_9, window_bounds = array<i64: 32, 32>}, {pipeline_mode = #tpu.pipeline_mode<synchronous>, transform_indices = @transform_10, window_bounds = array<i64: 1, 32>}, {pipeline_mode = #tpu.pipeline_mode<synchronous>, transform_indices = @transform_11, window_bounds = array<i64: 32, 32>}, {pipeline_mode = #tpu.pipeline_mode<synchronous>, transform_indices = @transform_12, window_bounds = array<i64: 1, 32>}, {pipeline_mode = #tpu.pipeline_mode<synchronous>, transform_indices = @transform_13, window_bounds = array<i64: 32, 32>}, {pipeline_mode = #tpu.pipeline_mode<synchronous>, transform_indices = @transform_14, window_bounds = array<i64: 1, 32>}, {pipeline_mode = #tpu.pipeline_mode<synchronous>, transform_indices = @transform_15, window_bounds = array<i64: 32, 32>}, {pipeline_mode = #tpu.pipeline_mode<synchronous>, transform_indices = @transform_16, window_bounds = array<i64: 1, 32>}, {transform_indices = @transform_17, window_bounds = array<i64: 1, 8, 32>}, {transform_indices = @transform_18, window_bounds = array<i64: 1, 8, 32>}, {transform_indices = @transform_19, window_bounds = array<i64: 1, 8, 32>}]} {
    %c0 = arith.constant 0 : index
    %c0_0 = arith.constant 0 : index
    %c0_1 = arith.constant 0 : index
    %0 = vector.load %arg1[%c0, %c0_0, %c0_1] : memref<1x8x32xf32, #tpu.memory_space<vmem>>, vector<1x8x32xf32>
    %1 = vector.shape_cast %0 : vector<1x8x32xf32> to vector<8x32xf32>
    %c0_2 = arith.constant 0 : index
    %c0_3 = arith.constant 0 : index
    %c0_4 = arith.constant 0 : index
    %2 = vector.load %arg2[%c0_2, %c0_3, %c0_4] : memref<1x8x32xf32, #tpu.memory_space<vmem>>, vector<1x8x32xf32>
    %3 = vector.shape_cast %2 : vector<1x8x32xf32> to vector<8x32xf32>
    %c0_5 = arith.constant 0 : index
    %c0_6 = arith.constant 0 : index
    %c0_7 = arith.constant 0 : index
    %4 = vector.load %arg3[%c0_5, %c0_6, %c0_7] : memref<1x8x32xf32, #tpu.memory_space<vmem>>, vector<1x8x32xf32>
    %5 = vector.shape_cast %4 : vector<1x8x32xf32> to vector<8x32xf32>
    %c0_8 = arith.constant 0 : index
    %c0_9 = arith.constant 0 : index
    %6 = vector.load %arg4[%c0_8, %c0_9] : memref<8x32xf32, #tpu.memory_space<vmem>>, vector<8x32xf32>
    %c0_10 = arith.constant 0 : index
    %c0_11 = arith.constant 0 : index
    %7 = vector.load %arg5[%c0_10, %c0_11] : memref<8x32xf32, #tpu.memory_space<vmem>>, vector<8x32xf32>
    %c0_12 = arith.constant 0 : index
    %c0_13 = arith.constant 0 : index
    %8 = vector.load %arg6[%c0_12, %c0_13] : memref<32x32xf32, #tpu.memory_space<vmem>>, vector<32x32xf32>
    %cst = arith.constant dense<0.000000e+00> : vector<8x32xf32>
    %9 = tpu.matmul %1, %8, %cst {dimension_numbers = #tpu.dot_dimension_numbers<[1], [0], [0], [1], [0, 0, 1, 1], [], []>} : vector<8x32xf32>, vector<32x32xf32>, vector<8x32xf32> -> vector<8x32xf32>
    %c0_14 = arith.constant 0 : index
    %c0_15 = arith.constant 0 : index
    %10 = vector.load %arg7[%c0_14, %c0_15] : memref<1x32xf32, #tpu.memory_space<vmem>>, vector<1x32xf32>
    %11 = vector.broadcast %10 : vector<1x32xf32> to vector<8x32xf32>
    %12 = arith.addf %9, %11 : vector<8x32xf32>
    %c0_16 = arith.constant 0 : index
    %c0_17 = arith.constant 0 : index
    %13 = vector.load %arg8[%c0_16, %c0_17] : memref<32x32xf32, #tpu.memory_space<vmem>>, vector<32x32xf32>
    %cst_18 = arith.constant dense<0.000000e+00> : vector<8x32xf32>
    %14 = tpu.matmul %1, %13, %cst_18 {dimension_numbers = #tpu.dot_dimension_numbers<[1], [0], [0], [1], [0, 0, 1, 1], [], []>} : vector<8x32xf32>, vector<32x32xf32>, vector<8x32xf32> -> vector<8x32xf32>
    %c0_19 = arith.constant 0 : index
    %c0_20 = arith.constant 0 : index
    %15 = vector.load %arg9[%c0_19, %c0_20] : memref<1x32xf32, #tpu.memory_space<vmem>>, vector<1x32xf32>
    %16 = vector.broadcast %15 : vector<1x32xf32> to vector<8x32xf32>
    %17 = arith.addf %14, %16 : vector<8x32xf32>
    %18 = arith.mulf %12, %6 : vector<8x32xf32>
    %19 = arith.mulf %17, %7 : vector<8x32xf32>
    %20 = arith.addf %18, %19 : vector<8x32xf32>
    %c0_21 = arith.constant 0 : index
    %c0_22 = arith.constant 0 : index
    %21 = vector.load %arg21[%c0_21, %c0_22] : memref<8x32xf32, #tpu.memory_space<vmem>>, vector<8x32xf32>
    tpu.vector_store %arg21[%c0_21, %c0_22], %20 {strides = array<i32>} : memref<8x32xf32, #tpu.memory_space<vmem>>, vector<8x32xf32>,
    %c0_23 = arith.constant 0 : index
    %c0_24 = arith.constant 0 : index
    %22 = vector.load %arg10[%c0_23, %c0_24] : memref<32x32xf32, #tpu.memory_space<vmem>>, vector<32x32xf32>
    %cst_25 = arith.constant dense<0.000000e+00> : vector<8x32xf32>
    %23 = tpu.matmul %3, %22, %cst_25 {dimension_numbers = #tpu.dot_dimension_numbers<[1], [0], [0], [1], [0, 0, 1, 1], [], []>} : vector<8x32xf32>, vector<32x32xf32>, vector<8x32xf32> -> vector<8x32xf32>
    %c0_26 = arith.constant 0 : index
    %c0_27 = arith.constant 0 : index
    %24 = vector.load %arg11[%c0_26, %c0_27] : memref<1x32xf32, #tpu.memory_space<vmem>>, vector<1x32xf32>
    %25 = vector.broadcast %24 : vector<1x32xf32> to vector<8x32xf32>
    %26 = arith.addf %23, %25 : vector<8x32xf32>
    %c0_28 = arith.constant 0 : index
    %c0_29 = arith.constant 0 : index
    %27 = vector.load %arg12[%c0_28, %c0_29] : memref<32x32xf32, #tpu.memory_space<vmem>>, vector<32x32xf32>
    %cst_30 = arith.constant dense<0.000000e+00> : vector<8x32xf32>
    %28 = tpu.matmul %3, %27, %cst_30 {dimension_numbers = #tpu.dot_dimension_numbers<[1], [0], [0], [1], [0, 0, 1, 1], [], []>} : vector<8x32xf32>, vector<32x32xf32>, vector<8x32xf32> -> vector<8x32xf32>
    %c0_31 = arith.constant 0 : index
    %c0_32 = arith.constant 0 : index
    %29 = vector.load %arg13[%c0_31, %c0_32] : memref<1x32xf32, #tpu.memory_space<vmem>>, vector<1x32xf32>
    %30 = vector.broadcast %29 : vector<1x32xf32> to vector<8x32xf32>
    %31 = arith.addf %28, %30 : vector<8x32xf32>
    %32 = arith.mulf %26, %6 : vector<8x32xf32>
    %33 = arith.mulf %31, %7 : vector<8x32xf32>
    %34 = arith.addf %32, %33 : vector<8x32xf32>
    %c0_33 = arith.constant 0 : index
    %c0_34 = arith.constant 0 : index
    %c0_35 = arith.constant 0 : index
    %35 = vector.load %arg19[%c0_33, %c0_34, %c0_35] : memref<1x8x32xf32, #tpu.memory_space<vmem>>, vector<1x8x32xf32>
    %36 = vector.shape_cast %35 : vector<1x8x32xf32> to vector<8x32xf32>
    %37 = vector.shape_cast %34 : vector<8x32xf32> to vector<1x8x32xf32>
    tpu.vector_store %arg19[%c0_33, %c0_34, %c0_35], %37 {strides = array<i32>} : memref<1x8x32xf32, #tpu.memory_space<vmem>>, vector<1x8x32xf32>,
    %c0_36 = arith.constant 0 : index
    %c0_37 = arith.constant 0 : index
    %38 = vector.load %arg14[%c0_36, %c0_37] : memref<32x32xf32, #tpu.memory_space<vmem>>, vector<32x32xf32>
    %cst_38 = arith.constant dense<0.000000e+00> : vector<8x32xf32>
    %39 = tpu.matmul %5, %38, %cst_38 {dimension_numbers = #tpu.dot_dimension_numbers<[1], [0], [0], [1], [0, 0, 1, 1], [], []>} : vector<8x32xf32>, vector<32x32xf32>, vector<8x32xf32> -> vector<8x32xf32>
    %c0_39 = arith.constant 0 : index
    %c0_40 = arith.constant 0 : index
    %40 = vector.load %arg15[%c0_39, %c0_40] : memref<1x32xf32, #tpu.memory_space<vmem>>, vector<1x32xf32>
    %41 = vector.broadcast %40 : vector<1x32xf32> to vector<8x32xf32>
    %42 = arith.addf %39, %41 : vector<8x32xf32>
    %c0_41 = arith.constant 0 : index
    %c0_42 = arith.constant 0 : index
    %c0_43 = arith.constant 0 : index
    %43 = vector.load %arg20[%c0_41, %c0_42, %c0_43] : memref<1x8x32xf32, #tpu.memory_space<vmem>>, vector<1x8x32xf32>
    %44 = vector.shape_cast %43 : vector<1x8x32xf32> to vector<8x32xf32>
    %45 = vector.shape_cast %42 : vector<8x32xf32> to vector<1x8x32xf32>
    tpu.vector_store %arg20[%c0_41, %c0_42, %c0_43], %45 {strides = array<i32>} : memref<1x8x32xf32, #tpu.memory_space<vmem>>, vector<1x8x32xf32>,
    %c0_44 = arith.constant 0 : index
    %c0_45 = arith.constant 0 : index
    %46 = vector.load %arg21[%c0_44, %c0_45] : memref<8x32xf32, #tpu.memory_space<vmem>>, vector<8x8xf32>
    %c0_46 = arith.constant 0 : index
    %c0_47 = arith.constant 0 : index
    %c0_48 = arith.constant 0 : index
    %47 = vector.load %arg19[%c0_46, %c0_47, %c0_48] : memref<1x8x32xf32, #tpu.memory_space<vmem>>, vector<1x8x8xf32>
    %48 = vector.shape_cast %47 : vector<1x8x8xf32> to vector<8x8xf32>
    %c0_49 = arith.constant 0 : index
    %c0_50 = arith.constant 0 : index
    %c0_51 = arith.constant 0 : index
    %49 = vector.load %arg20[%c0_49, %c0_50, %c0_51] : memref<1x8x32xf32, #tpu.memory_space<vmem>>, vector<1x8x8xf32>
    %50 = vector.shape_cast %49 : vector<1x8x8xf32> to vector<8x8xf32>
    %cst_52 = arith.constant dense<0.000000e+00> : vector<8x8xf32>
    %51 = tpu.matmul %46, %48, %cst_52 {dimension_numbers = #tpu.dot_dimension_numbers<[1], [1], [0], [0], [0, 0, 1, 0], [], []>} : vector<8x8xf32>, vector<8x8xf32>, vector<8x8xf32> -> vector<8x8xf32>
    %cst_53 = arith.constant dense<0xFF800000> : vector<8xf32>
    %52 = vector.multi_reduction <maximumf>, %51, %cst_53 [1] : vector<8x8xf32> to vector<8xf32>
    %53 = vector.shape_cast %52 : vector<8xf32> to vector<8x1xf32>
    %54 = vector.broadcast %53 : vector<8x1xf32> to vector<8x8xf32>
    %55 = arith.subf %51, %54 : vector<8x8xf32>
    %56 = math.exp %55 : vector<8x8xf32>
    %cst_54 = arith.constant dense<0.000000e+00> : vector<8xf32>
    %57 = vector.multi_reduction <add>, %56, %cst_54 [1] : vector<8x8xf32> to vector<8xf32>
    %58 = vector.shape_cast %57 : vector<8xf32> to vector<8x1xf32>
    %cst_55 = arith.constant dense<0.000000e+00> : vector<8x8xf32>
    %59 = tpu.matmul %56, %50, %cst_55 {dimension_numbers = #tpu.dot_dimension_numbers<[1], [0], [0], [1], [0, 0, 1, 1], [], []>} : vector<8x8xf32>, vector<8x8xf32>, vector<8x8xf32> -> vector<8x8xf32>
    %60 = tpu.reciprocal %58 {approx = true} : vector<8x1xf32> -> vector<8x1xf32>
    %61 = arith.mulf %58, %60 : vector<8x1xf32>
    %cst_56 = arith.constant 2.000000e+00 : f32
    %62 = vector.broadcast %cst_56 : f32 to vector<8x1xf32>
    %63 = arith.subf %62, %61 : vector<8x1xf32>
    %64 = arith.mulf %60, %63 : vector<8x1xf32>
    %65 = vector.broadcast %64 : vector<8x1xf32> to vector<8x8xf32>
    %66 = arith.mulf %59, %65 : vector<8x8xf32>
    %c0_57 = arith.constant 0 : index
    %c0_58 = arith.constant 0 : index
    %67 = vector.load %arg22[%c0_57, %c0_58] : memref<8x32xf32, #tpu.memory_space<vmem>>, vector<8x8xf32>
    tpu.vector_store %arg22[%c0_57, %c0_58], %66 {strides = array<i32>} : memref<8x32xf32, #tpu.memory_space<vmem>>, vector<8x8xf32>,
    %c0_59 = arith.constant 0 : index
    %c8 = arith.constant 8 : index
    %68 = vector.load %arg21[%c0_59, %c8] : memref<8x32xf32, #tpu.memory_space<vmem>>, vector<8x8xf32>
    %c0_60 = arith.constant 0 : index
    %c0_61 = arith.constant 0 : index
    %c8_62 = arith.constant 8 : index
    %69 = vector.load %arg19[%c0_60, %c0_61, %c8_62] : memref<1x8x32xf32, #tpu.memory_space<vmem>>, vector<1x8x8xf32>
    %70 = vector.shape_cast %69 : vector<1x8x8xf32> to vector<8x8xf32>
    %c0_63 = arith.constant 0 : index
    %c0_64 = arith.constant 0 : index
    %c8_65 = arith.constant 8 : index
    %71 = vector.load %arg20[%c0_63, %c0_64, %c8_65] : memref<1x8x32xf32, #tpu.memory_space<vmem>>, vector<1x8x8xf32>
    %72 = vector.shape_cast %71 : vector<1x8x8xf32> to vector<8x8xf32>
    %cst_66 = arith.constant dense<0.000000e+00> : vector<8x8xf32>
    %73 = tpu.matmul %68, %70, %cst_66 {dimension_numbers = #tpu.dot_dimension_numbers<[1], [1], [0], [0], [0, 0, 1, 0], [], []>} : vector<8x8xf32>, vector<8x8xf32>, vector<8x8xf32> -> vector<8x8xf32>
    %cst_67 = arith.constant dense<0xFF800000> : vector<8xf32>
    %74 = vector.multi_reduction <maximumf>, %73, %cst_67 [1] : vector<8x8xf32> to vector<8xf32>
    %75 = vector.shape_cast %74 : vector<8xf32> to vector<8x1xf32>
    %76 = vector.broadcast %75 : vector<8x1xf32> to vector<8x8xf32>
    %77 = arith.subf %73, %76 : vector<8x8xf32>
    %78 = math.exp %77 : vector<8x8xf32>
    %cst_68 = arith.constant dense<0.000000e+00> : vector<8xf32>
    %79 = vector.multi_reduction <add>, %78, %cst_68 [1] : vector<8x8xf32> to vector<8xf32>
    %80 = vector.shape_cast %79 : vector<8xf32> to vector<8x1xf32>
    %cst_69 = arith.constant dense<0.000000e+00> : vector<8x8xf32>
    %81 = tpu.matmul %78, %72, %cst_69 {dimension_numbers = #tpu.dot_dimension_numbers<[1], [0], [0], [1], [0, 0, 1, 1], [], []>} : vector<8x8xf32>, vector<8x8xf32>, vector<8x8xf32> -> vector<8x8xf32>
    %82 = tpu.reciprocal %80 {approx = true} : vector<8x1xf32> -> vector<8x1xf32>
    %83 = arith.mulf %80, %82 : vector<8x1xf32>
    %cst_70 = arith.constant 2.000000e+00 : f32
    %84 = vector.broadcast %cst_70 : f32 to vector<8x1xf32>
    %85 = arith.subf %84, %83 : vector<8x1xf32>
    %86 = arith.mulf %82, %85 : vector<8x1xf32>
    %87 = vector.broadcast %86 : vector<8x1xf32> to vector<8x8xf32>
    %88 = arith.mulf %81, %87 : vector<8x8xf32>
    %c0_71 = arith.constant 0 : index
    %c8_72 = arith.constant 8 : index
    %89 = vector.load %arg22[%c0_71, %c8_72] : memref<8x32xf32, #tpu.memory_space<vmem>>, vector<8x8xf32>
    tpu.vector_store %arg22[%c0_71, %c8_72], %88 {strides = array<i32>} : memref<8x32xf32, #tpu.memory_space<vmem>>, vector<8x8xf32>,
    %c0_73 = arith.constant 0 : index
    %c16 = arith.constant 16 : index
    %90 = vector.load %arg21[%c0_73, %c16] : memref<8x32xf32, #tpu.memory_space<vmem>>, vector<8x8xf32>
    %c0_74 = arith.constant 0 : index
    %c0_75 = arith.constant 0 : index
    %c16_76 = arith.constant 16 : index
    %91 = vector.load %arg19[%c0_74, %c0_75, %c16_76] : memref<1x8x32xf32, #tpu.memory_space<vmem>>, vector<1x8x8xf32>
    %92 = vector.shape_cast %91 : vector<1x8x8xf32> to vector<8x8xf32>
    %c0_77 = arith.constant 0 : index
    %c0_78 = arith.constant 0 : index
    %c16_79 = arith.constant 16 : index
    %93 = vector.load %arg20[%c0_77, %c0_78, %c16_79] : memref<1x8x32xf32, #tpu.memory_space<vmem>>, vector<1x8x8xf32>
    %94 = vector.shape_cast %93 : vector<1x8x8xf32> to vector<8x8xf32>
    %cst_80 = arith.constant dense<0.000000e+00> : vector<8x8xf32>
    %95 = tpu.matmul %90, %92, %cst_80 {dimension_numbers = #tpu.dot_dimension_numbers<[1], [1], [0], [0], [0, 0, 1, 0], [], []>} : vector<8x8xf32>, vector<8x8xf32>, vector<8x8xf32> -> vector<8x8xf32>
    %cst_81 = arith.constant dense<0xFF800000> : vector<8xf32>
    %96 = vector.multi_reduction <maximumf>, %95, %cst_81 [1] : vector<8x8xf32> to vector<8xf32>
    %97 = vector.shape_cast %96 : vector<8xf32> to vector<8x1xf32>
    %98 = vector.broadcast %97 : vector<8x1xf32> to vector<8x8xf32>
    %99 = arith.subf %95, %98 : vector<8x8xf32>
    %100 = math.exp %99 : vector<8x8xf32>
    %cst_82 = arith.constant dense<0.000000e+00> : vector<8xf32>
    %101 = vector.multi_reduction <add>, %100, %cst_82 [1] : vector<8x8xf32> to vector<8xf32>
    %102 = vector.shape_cast %101 : vector<8xf32> to vector<8x1xf32>
    %cst_83 = arith.constant dense<0.000000e+00> : vector<8x8xf32>
    %103 = tpu.matmul %100, %94, %cst_83 {dimension_numbers = #tpu.dot_dimension_numbers<[1], [0], [0], [1], [0, 0, 1, 1], [], []>} : vector<8x8xf32>, vector<8x8xf32>, vector<8x8xf32> -> vector<8x8xf32>
    %104 = tpu.reciprocal %102 {approx = true} : vector<8x1xf32> -> vector<8x1xf32>
    %105 = arith.mulf %102, %104 : vector<8x1xf32>
    %cst_84 = arith.constant 2.000000e+00 : f32
    %106 = vector.broadcast %cst_84 : f32 to vector<8x1xf32>
    %107 = arith.subf %106, %105 : vector<8x1xf32>
    %108 = arith.mulf %104, %107 : vector<8x1xf32>
    %109 = vector.broadcast %108 : vector<8x1xf32> to vector<8x8xf32>
    %110 = arith.mulf %103, %109 : vector<8x8xf32>
    %c0_85 = arith.constant 0 : index
    %c16_86 = arith.constant 16 : index
    %111 = vector.load %arg22[%c0_85, %c16_86] : memref<8x32xf32, #tpu.memory_space<vmem>>, vector<8x8xf32>
    tpu.vector_store %arg22[%c0_85, %c16_86], %110 {strides = array<i32>} : memref<8x32xf32, #tpu.memory_space<vmem>>, vector<8x8xf32>,
    %c0_87 = arith.constant 0 : index
    %c24 = arith.constant 24 : index
    %112 = vector.load %arg21[%c0_87, %c24] : memref<8x32xf32, #tpu.memory_space<vmem>>, vector<8x8xf32>
    %c0_88 = arith.constant 0 : index
    %c0_89 = arith.constant 0 : index
    %c24_90 = arith.constant 24 : index
    %113 = vector.load %arg19[%c0_88, %c0_89, %c24_90] : memref<1x8x32xf32, #tpu.memory_space<vmem>>, vector<1x8x8xf32>
    %114 = vector.shape_cast %113 : vector<1x8x8xf32> to vector<8x8xf32>
    %c0_91 = arith.constant 0 : index
    %c0_92 = arith.constant 0 : index
    %c24_93 = arith.constant 24 : index
    %115 = vector.load %arg20[%c0_91, %c0_92, %c24_93] : memref<1x8x32xf32, #tpu.memory_space<vmem>>, vector<1x8x8xf32>
    %116 = vector.shape_cast %115 : vector<1x8x8xf32> to vector<8x8xf32>
    %cst_94 = arith.constant dense<0.000000e+00> : vector<8x8xf32>
    %117 = tpu.matmul %112, %114, %cst_94 {dimension_numbers = #tpu.dot_dimension_numbers<[1], [1], [0], [0], [0, 0, 1, 0], [], []>} : vector<8x8xf32>, vector<8x8xf32>, vector<8x8xf32> -> vector<8x8xf32>
    %cst_95 = arith.constant dense<0xFF800000> : vector<8xf32>
    %118 = vector.multi_reduction <maximumf>, %117, %cst_95 [1] : vector<8x8xf32> to vector<8xf32>
    %119 = vector.shape_cast %118 : vector<8xf32> to vector<8x1xf32>
    %120 = vector.broadcast %119 : vector<8x1xf32> to vector<8x8xf32>
    %121 = arith.subf %117, %120 : vector<8x8xf32>
    %122 = math.exp %121 : vector<8x8xf32>
    %cst_96 = arith.constant dense<0.000000e+00> : vector<8xf32>
    %123 = vector.multi_reduction <add>, %122, %cst_96 [1] : vector<8x8xf32> to vector<8xf32>
    %124 = vector.shape_cast %123 : vector<8xf32> to vector<8x1xf32>
    %cst_97 = arith.constant dense<0.000000e+00> : vector<8x8xf32>
    %125 = tpu.matmul %122, %116, %cst_97 {dimension_numbers = #tpu.dot_dimension_numbers<[1], [0], [0], [1], [0, 0, 1, 1], [], []>} : vector<8x8xf32>, vector<8x8xf32>, vector<8x8xf32> -> vector<8x8xf32>
    %126 = tpu.reciprocal %124 {approx = true} : vector<8x1xf32> -> vector<8x1xf32>
    %127 = arith.mulf %124, %126 : vector<8x1xf32>
    %cst_98 = arith.constant 2.000000e+00 : f32
    %128 = vector.broadcast %cst_98 : f32 to vector<8x1xf32>
    %129 = arith.subf %128, %127 : vector<8x1xf32>
    %130 = arith.mulf %126, %129 : vector<8x1xf32>
    %131 = vector.broadcast %130 : vector<8x1xf32> to vector<8x8xf32>
    %132 = arith.mulf %125, %131 : vector<8x8xf32>
    %c0_99 = arith.constant 0 : index
    %c24_100 = arith.constant 24 : index
    %133 = vector.load %arg22[%c0_99, %c24_100] : memref<8x32xf32, #tpu.memory_space<vmem>>, vector<8x8xf32>
    tpu.vector_store %arg22[%c0_99, %c24_100], %132 {strides = array<i32>} : memref<8x32xf32, #tpu.memory_space<vmem>>, vector<8x8xf32>,
    %c0_101 = arith.constant 0 : index
    %c0_102 = arith.constant 0 : index
    %134 = vector.load %arg22[%c0_101, %c0_102] : memref<8x32xf32, #tpu.memory_space<vmem>>, vector<8x32xf32>
    %c0_103 = arith.constant 0 : index
    %c0_104 = arith.constant 0 : index
    %135 = vector.load %arg16[%c0_103, %c0_104] : memref<32x32xf32, #tpu.memory_space<vmem>>, vector<32x32xf32>
    %cst_105 = arith.constant dense<0.000000e+00> : vector<8x32xf32>
    %136 = tpu.matmul %134, %135, %cst_105 {dimension_numbers = #tpu.dot_dimension_numbers<[1], [0], [0], [1], [0, 0, 1, 1], [], []>} : vector<8x32xf32>, vector<32x32xf32>, vector<8x32xf32> -> vector<8x32xf32>
    %c0_106 = arith.constant 0 : index
    %c0_107 = arith.constant 0 : index
    %137 = vector.load %arg17[%c0_106, %c0_107] : memref<1x32xf32, #tpu.memory_space<vmem>>, vector<1x32xf32>
    %138 = vector.broadcast %137 : vector<1x32xf32> to vector<8x32xf32>
    %139 = arith.addf %136, %138 : vector<8x32xf32>
    %c0_108 = arith.constant 0 : index
    %c0_109 = arith.constant 0 : index
    %c0_110 = arith.constant 0 : index
    %140 = vector.load %arg18[%c0_108, %c0_109, %c0_110] : memref<1x8x32xf32, #tpu.memory_space<vmem>>, vector<1x8x32xf32>
    %141 = vector.shape_cast %140 : vector<1x8x32xf32> to vector<8x32xf32>
    %142 = vector.shape_cast %139 : vector<8x32xf32> to vector<1x8x32xf32>
    tpu.vector_store %arg18[%c0_108, %c0_109, %c0_110], %142 {strides = array<i32>} : memref<1x8x32xf32, #tpu.memory_space<vmem>>, vector<1x8x32xf32>,
    return
  }
  func.func @transform_0(%arg0: i32) -> (i32, i32, i32) {
    %c0_i32 = arith.constant 0 : i32
    %c0_i32_0 = arith.constant 0 : i32
    %c0_i32_1 = arith.constant 0 : i32
    return %arg0, %c0_i32, %c0_i32_0 : i32, i32, i32
  }
  func.func @transform_1(%arg0: i32) -> (i32, i32, i32) {
    %c0_i32 = arith.constant 0 : i32
    %c0_i32_0 = arith.constant 0 : i32
    %c0_i32_1 = arith.constant 0 : i32
    return %arg0, %c0_i32, %c0_i32_0 : i32, i32, i32
  }
  func.func @transform_2(%arg0: i32) -> (i32, i32, i32) {
    %c0_i32 = arith.constant 0 : i32
    %c0_i32_0 = arith.constant 0 : i32
    %c0_i32_1 = arith.constant 0 : i32
    return %arg0, %c0_i32, %c0_i32_0 : i32, i32, i32
  }
  func.func @transform_3(%arg0: i32) -> (i32, i32) {
    %c0_i32 = arith.constant 0 : i32
    %c0_i32_0 = arith.constant 0 : i32
    %c0_i32_1 = arith.constant 0 : i32
    return %c0_i32, %c0_i32_0 : i32, i32
  }
  func.func @transform_4(%arg0: i32) -> (i32, i32) {
    %c0_i32 = arith.constant 0 : i32
    %c0_i32_0 = arith.constant 0 : i32
    %c0_i32_1 = arith.constant 0 : i32
    return %c0_i32, %c0_i32_0 : i32, i32
  }
  func.func @transform_5(%arg0: i32) -> (i32, i32) {
    %c0_i32 = arith.constant 0 : i32
    %c0_i32_0 = arith.constant 0 : i32
    %c0_i32_1 = arith.constant 0 : i32
    return %c0_i32, %c0_i32_0 : i32, i32
  }
  func.func @transform_6(%arg0: i32) -> (i32, i32) {
    %c0_i32 = arith.constant 0 : i32
    %c0_i32_0 = arith.constant 0 : i32
    %c0_i32_1 = arith.constant 0 : i32
    return %c0_i32, %c0_i32_0 : i32, i32
  }
  func.func @transform_7(%arg0: i32) -> (i32, i32) {
    %c0_i32 = arith.constant 0 : i32
    %c0_i32_0 = arith.constant 0 : i32
    %c0_i32_1 = arith.constant 0 : i32
    return %c0_i32, %c0_i32_0 : i32, i32
  }
  func.func @transform_8(%arg0: i32) -> (i32, i32) {
    %c0_i32 = arith.constant 0 : i32
    %c0_i32_0 = arith.constant 0 : i32
    %c0_i32_1 = arith.constant 0 : i32
    return %c0_i32, %c0_i32_0 : i32, i32
  }
  func.func @transform_9(%arg0: i32) -> (i32, i32) {
    %c0_i32 = arith.constant 0 : i32
    %c0_i32_0 = arith.constant 0 : i32
    %c0_i32_1 = arith.constant 0 : i32
    return %c0_i32, %c0_i32_0 : i32, i32
  }
  func.func @transform_10(%arg0: i32) -> (i32, i32) {
    %c0_i32 = arith.constant 0 : i32
    %c0_i32_0 = arith.constant 0 : i32
    %c0_i32_1 = arith.constant 0 : i32
    return %c0_i32, %c0_i32_0 : i32, i32
  }
  func.func @transform_11(%arg0: i32) -> (i32, i32) {
    %c0_i32 = arith.constant 0 : i32
    %c0_i32_0 = arith.constant 0 : i32
    %c0_i32_1 = arith.constant 0 : i32
    return %c0_i32, %c0_i32_0 : i32, i32
  }
  func.func @transform_12(%arg0: i32) -> (i32, i32) {
    %c0_i32 = arith.constant 0 : i32
    %c0_i32_0 = arith.constant 0 : i32
    %c0_i32_1 = arith.constant 0 : i32
    return %c0_i32, %c0_i32_0 : i32, i32
  }
  func.func @transform_13(%arg0: i32) -> (i32, i32) {
    %c0_i32 = arith.constant 0 : i32
    %c0_i32_0 = arith.constant 0 : i32
    %c0_i32_1 = arith.constant 0 : i32
    return %c0_i32, %c0_i32_0 : i32, i32
  }
  func.func @transform_14(%arg0: i32) -> (i32, i32) {
    %c0_i32 = arith.constant 0 : i32
    %c0_i32_0 = arith.constant 0 : i32
    %c0_i32_1 = arith.constant 0 : i32
    return %c0_i32, %c0_i32_0 : i32, i32
  }
  func.func @transform_15(%arg0: i32) -> (i32, i32) {
    %c0_i32 = arith.constant 0 : i32
    %c0_i32_0 = arith.constant 0 : i32
    %c0_i32_1 = arith.constant 0 : i32
    return %c0_i32, %c0_i32_0 : i32, i32
  }
  func.func @transform_16(%arg0: i32) -> (i32, i32) {
    %c0_i32 = arith.constant 0 : i32
    %c0_i32_0 = arith.constant 0 : i32
    %c0_i32_1 = arith.constant 0 : i32
    return %c0_i32, %c0_i32_0 : i32, i32
  }
  func.func @transform_17(%arg0: i32) -> (i32, i32, i32) {
    %c0_i32 = arith.constant 0 : i32
    %c0_i32_0 = arith.constant 0 : i32
    %c0_i32_1 = arith.constant 0 : i32
    return %arg0, %c0_i32, %c0_i32_0 : i32, i32, i32
  }
  func.func @transform_18(%arg0: i32) -> (i32, i32, i32) {
    %c0_i32 = arith.constant 0 : i32
    %c0_i32_0 = arith.constant 0 : i32
    %c0_i32_1 = arith.constant 0 : i32
    return %arg0, %c0_i32, %c0_i32_0 : i32, i32, i32
  }
  func.func @transform_19(%arg0: i32) -> (i32, i32, i32) {
    %c0_i32 = arith.constant 0 : i32
    %c0_i32_0 = arith.constant 0 : i32
    %c0_i32_1 = arith.constant 0 : i32
    return %arg0, %c0_i32, %c0_i32_0 : i32, i32, i32
  }
}

</mosaic_0001>

<bundles_post_ra>
// kernel: tpu_custom_call.1
= control target key start
LH: loop header
LB: loop body
LE: loop exit
PB: predicated region body
PF: predicated region fallthrough
CT: control target
= control target key end

     0   :  { %s2868_s0 = inlined_call_operand.hbm [shape: f32[2,8,32], index: 0, kind: input, shape index: {}]   ;;  %s2869_s1 = inlined_call_operand.hbm [shape: f32[2,8,32], index: 1, kind: input, shape index: {}]   ;;  %s2870_s2 = inlined_call_operand.hbm [shape: f32[2,8,32], index: 2, kind: input, shape index: {}]   ;;  %s2871_s3 = inlined_call_operand.hbm [shape: f32[8,32], index: 3, kind: input, shape index: {}]   ;;  %s2872_s4 = inlined_call_operand.hbm [shape: f32[8,32], index: 4, kind: input, shape index: {}]   ;;  %s2873_s5 = inlined_call_operand.hbm [shape: f32[32,32], index: 5, kind: input, shape index: {}]   ;;  %s2874_s6 = inlined_call_operand.vmem [shape: f32[1,32], index: 6, kind: input, shape index: {}]   ;;  %s2875_s7 = inlined_call_operand.hbm [shape: f32[32,32], index: 7, kind: input, shape index: {}]   ;;  %s2876_s8 = inlined_call_operand.vmem [shape: f32[1,32], index: 8, kind: input, shape index: {}]   ;;  %s2877_s9 = inlined_call_operand.hbm [shape: f32[32,32], index: 9, kind: input, shape index: {}]   ;;  %s2878_s10 = inlined_call_operand.vmem [shape: f32[1,32], index: 10, kind: input, shape index: {}]   ;;  %s2879_s11 = inlined_call_operand.hbm [shape: f32[32,32], index: 11, kind: input, shape index: {}]   ;;  %s2880_s12 = inlined_call_operand.vmem [shape: f32[1,32], index: 12, kind: input, shape index: {}]   ;;  %s2881_s13 = inlined_call_operand.hbm [shape: f32[32,32], index: 13, kind: input, shape index: {}]   ;;  %s2882_s14 = inlined_call_operand.vmem [shape: f32[1,32], index: 14, kind: input, shape index: {}]   ;;  %s2883_s15 = inlined_call_operand.hbm [shape: f32[32,32], index: 15, kind: input, shape index: {}]   ;;  %s2884_s16 = inlined_call_operand.vmem [shape: f32[1,32], index: 16, kind: input, shape index: {}]   ;;  %s2885_s17 = inlined_call_operand.hbm [shape: f32[2,8,32], index: 17, kind: output, shape index: {0}]   ;;  %s2886_s18 = inlined_call_operand.hbm [shape: f32[2,8,32], index: 18, kind: output, shape index: {1}]   ;;  %s2887_s19 = inlined_call_operand.hbm [shape: f32[2,8,32], index: 19, kind: output, shape index: {2}]  }
   0x1   :  { %2910 = sst [smem:[#allocation40_spill]] %s2868_s0 }
   0x2   :  { %2911 = sst [smem:[#allocation41_spill]] %s2869_s1 }
   0x3   :  { %2912 = sst [smem:[#allocation42_spill]] %s2870_s2 }
   0x4   :  { %2913 = sst [smem:[#allocation43_spill]] %s2871_s3 }
   0x5   :  { %2914 = sst [smem:[#allocation44_spill]] %s2872_s4 }
   0x6   :  { %2915 = sst [smem:[#allocation45_spill]] %s2873_s5 }
   0x7   :  { %2916 = sst [smem:[#allocation46_spill]] %s2875_s7 }
   0x8   :  { %2917 = sst [smem:[#allocation47_spill]] %s2877_s9 }
   0x9   :  { %2918 = sst [smem:[#allocation48_spill]] %s2881_s13 }
   0xa   :  { %2919 = sst [smem:[#allocation49_spill]] %s2882_s14 }
   0xb   :  { %2920 = sst [smem:[#allocation50_spill]] %s2884_s16 }
   0xc   :  { %2921 = sst [smem:[#allocation51_spill]] %s2885_s17 }
   0xd   :  { %2922 = sst [smem:[#allocation52_spill]] %s2886_s18 }
   0xe   :  { %2923 = sst [smem:[#allocation53_spill]] %s2887_s19 }
   0xf   :  { %25 = vsyncpa [#allocation5], 0 }
  0x10   :  { %27 = vsyncpa [#allocation5 + $0x1], 0 }
  0x11   :  { %28 = vsyncpa [#allocation8], 0 }
  0x12   :  { %30 = vsyncpa [#allocation8 + $0x1], 0 }
  0x13   :  { %31 = vsyncpa [#allocation11], 0 }
  0x14   :  { %32 = vsyncpa [#allocation14], 0 }
  0x15   :  { %33 = vsyncpa [#allocation17], 0 }
  0x16   :  { %34 = vsyncpa [#allocation20], 0 }
  0x17   :  { %35 = vsyncpa [#allocation6], 0 }
  0x18   :  { %37 = vsyncpa [#allocation6 + $0x1], 0 }
  0x19   :  { %38 = vsyncpa [#allocation24], 0 }
  0x1a   :  { %40 = vsyncpa [#allocation24 + $0x1], 0  ;;  %s2481_s0 = smov 0   ;;  %s2483_s30 = smov 0  }
  0x1b   :  { %s2485_s20 = smov 0   ;;  %s2487_s21 = smov 0  }
  0x1c LB: > { %2924 = sst [smem:[#allocation34_spill]] %s2351_s0  ;;  %s2505_s24 = sadd.s32 4294967295, %s2363_s21   ;;  %s2363_s21 = sphi %s2487_s21, %s2967_s21   ;;  %s2359_s20 = sphi %s2485_s20, %s2971_s20   ;;  %s2355_s30 = sphi %s2483_s30, %s2970_s30   ;;  %s2351_s0 = sphi %s2481_s0, %s2969_s0  }
  0x1d   : > { %2925 = sst [smem:[#allocation35_spill]] %s2363_s21  ;;  %p1653_p0 = scmp.ge.s32.totalorder %s2363_s21, 1 }
  0x1e   : > { %s2926_s2 = sld [smem:[#allocation43_spill]]  ;;  %p2906_p1 = scmp.eq.s32.totalorder %s2505_s24, 0 }
  0x1f   : > { %p501_p2 = scmp.lt.s32.totalorder %s2363_s21, 3  ;;  %s2365_s3 = smov [#allocation10]  }
  0x20   : > { %s515_s26 = sshll.u32 %s2365_s3, 4  ;;  %s2928_s5 = sld [smem:[#allocation45_spill]]  ;;  %s516_s26 = int_to_ptr.vmem [resolvable:$true] %s515_s26 }
  0x21   : > { %p2510_p3 = pnand %p1653_p0, %p501_p2  ;;  %s2366_s22 = smov [#allocation13]  }
  0x22   : > { %s2894_s3 = smov 128   ;;  %s2896_s27 = smov 8  }
  0x23   : > { %p1754_p5 = pneg %p2510_p3  ;;  %s2930_s9 = sld [smem:[#allocation47_spill]] }
  0x24   : > { %s513_s23 = sshll.u32 %s2926_s2, 4  ;;  %s538_s2 = sshll.u32 %s2366_s22, 4  ;;  %s514_s23 = int_to_ptr.hbm [resolvable:$true] %s513_s23  ;;  %s539_s2 = int_to_ptr.vmem [resolvable:$true] %s538_s2 }
  0x25   : > { %p2522_p6 = pnand %p1754_p5, %p2906_p1  ;;  %s2369_s22 = smov [#allocation16]  }
  0x26   : > { %s536_s29 = sshll.u32 %s2928_s5, 4  ;;  %s2931_s13 = sld [smem:[#allocation48_spill]]  ;;  %s537_s29 = int_to_ptr.hbm [resolvable:$true] %s536_s29 }
  0x27   : > { %1757 = dma.hbm_to_vmem [thread:$0]  (!%p2522_p6), %s514_s23, 128, %s516_s26, [#allocation11]  }
  0x28   : > { %1763 = dma.hbm_to_vmem [thread:$0]  (!%p2522_p6), %s537_s29, 512, %s539_s2, [#allocation14], %s2894_s3, %s2894_s3, %s2896_s27  }
  0x29   : > { %s570_s16 = sshll.u32 %s2930_s9, 4  ;;  %s572_s23 = sshll.u32 %s2369_s22, 4  ;;  %s571_s16 = int_to_ptr.hbm [resolvable:$true] %s570_s16  ;;  %s573_s23 = int_to_ptr.vmem [resolvable:$true] %s572_s23 }
  0x2a   : > { %1769 = dma.hbm_to_vmem [thread:$0]  (!%p2522_p6), %s571_s16, 512, %s573_s23, [#allocation17], %s2894_s3, %s2894_s3, %s2896_s27  }
  0x2b   : > { %s2370_s5 = smov [#allocation19]   ;;  %s2893_s17 = sadd.s32 4294967294, %s2363_s21  }
  0x2c   : > { %s604_s19 = sshll.u32 %s2931_s13, 4  ;;  %s606_s29 = sshll.u32 %s2370_s5, 4  ;;  %s605_s19 = int_to_ptr.hbm [resolvable:$true] %s604_s19  ;;  %s607_s29 = int_to_ptr.vmem [resolvable:$true] %s606_s29 }
  0x2d   : > { %1775 = dma.hbm_to_vmem [thread:$0]  (!%p2522_p6), %s605_s19, 512, %s607_s29, [#allocation20], %s2894_s3, %s2894_s3, %s2896_s27  }
  0x2e   : > { %s2551_s2 = sadd.s32 1, %s2363_s21   ;;  %s53_s28 = sadd.s32 1, %s2359_s20 }
  0x2f   : > { %2932 = sst [smem:[#allocation36_spill]] %s2551_s2  ;;  %s50_s16 = ssub.s32 %s2363_s21, %s2551_s2 }
  0x30   : > { %p51_p7 = scmp.eq.s32.totalorder %s50_s16, 0  ;;  %p60_p8 = scmp.ne.s32.totalorder %s2359_s20, %s2355_s30 }
  0x31   : > { %p61_p9 = scmp.eq.s32.totalorder %s2363_s21, 0  ;;  %p66_p10 = scmp.ne.s32.totalorder %s2355_s30, %s2351_s0 }
  0x32   : > { %s2562_s22 = scalar_select %p51_p7, %s2359_s20, %s53_s28  }
  0x33   : > { %p62_p11 = por %p61_p9, %p60_p8  ;;  %p2566_p12 = por %p2906_p1, %p66_p10 }
  0x34   : > { %2933 = sst [smem:[#allocation37_spill]] %s2562_s22  ;;  %p436_p13 = scmp.eq.s32.totalorder %s2505_s24, 1 }
  0x35   : > { %p442_p0 = scmp.eq.s32.totalorder %s2893_s17, 1  ;;  %p1807_p2 = scmp.lt.s32.totalorder %s2363_s21, 2 }
  0x36   : > { %s2901_s19 = sand.u32 1, %s2359_s20   ;;  %p2575_p5 = por %p436_p13, %p60_p8 }
  0x37   : > { %p2579_p4 = por %p442_p0, %p66_p10  ;;  %s2585_s29 = sshll.u32 %s2901_s19, 3 }
  0x38   : > { %s2935_s26 = scalar_select %p2575_p5, 1, 0 }
  0x39   : > { %s2937_s5 = scalar_select %p2579_p4, 1, 0 }
  0x3a   : > { %2936 = sst [smem:[#allocation38_spill]] %s2935_s26  ;;  %s2588_s16 = sshll.u32 %s2363_s21, 3 }
  0x3b   : > { %2938 = sst [smem:[#allocation39_spill]] %s2937_s5  ;;  %p2590_p7 = pnand %p1807_p2, %p62_p11 }
  0x3c   : > { %s659_s17 = sand.u32 1, %s2363_s21   ;;  %s2940_s9 = sld [smem:[#allocation41_spill]] }
  0x3d   : > { %s663_s2 = scalar_lea.vmem [#allocation7], %s2585_s29  ;;  %s2600_s19 = scalar_lea.sflag [#allocation8], %s659_s17 }
  0x3e   : > { %s671_s5 = sshll.u32 %s663_s2, 4  ;;  %p2011_p9 = pneg %p2590_p7  ;;  %s672_s5 = int_to_ptr.vmem [resolvable:$true] %s671_s5 }
  0x42   : > { %s667_s13 = scalar_lea.hbm %s2940_s9, %s2588_s16 }
  0x43   : > { %s669_s22 = sshll.u32 %s667_s13, 4  ;;  %s2014_s13 = scalar_lea.hbm %s2940_s9, 16  ;;  %s670_s22 = int_to_ptr.hbm [resolvable:$true] %s669_s22 }
  0x44   : > { %s2007_s0 = sshra.s32 %s670_s22, 4  ;;  %s2008_s0 = int_to_ptr.hbm [resolvable:$true] %s2007_s0 }
  0x45   : > { %s2009_s18 = scalar_lea.hbm %s2008_s0, 8  ;;  %p2015_p13 = scmp.lt.s32.totalorder %s2008_s0, %s2940_s9 }
  0x46   : > { %p2010_p8 = scmp.ne.s32.totalorder %s2008_s0, %s2009_s18  ;;  %p2016_p0 = scmp.lt.s32.totalorder %s2014_s13, %s2009_s18 }
  0x48   : > { %p2012_p10 = pnand %p2011_p9, %p2010_p8  ;;  %p2017_p2 = por %p2016_p0, %p2015_p13 }
  0x4a   : > { %p2013_p11 = pneg %p2012_p10 }
  0x4c   : > { %p2018_p1 = pnand %p2017_p2, %p2013_p11 }
  0x4e   : > { %2021 = shalt.err (!%p2018_p1)
}
  0x4f   : > { %1785 = dma.hbm_to_vmem [thread:$0]  (!%p2590_p7), %s670_s22, 128, %s672_s5, %s2600_s19  }
  0x50   : > { %s2941_s4 = sld [smem:[#allocation44_spill]]  ;;  %s2371_s21 = smov [#allocation12]  }
  0x51   : > { %s527_s3 = sshll.u32 %s2371_s21, 4  ;;  %s2942_s7 = sld [smem:[#allocation46_spill]]  ;;  %s528_s3 = int_to_ptr.vmem [resolvable:$true] %s527_s3 }
  0x52   : > { %s2372_s27 = smov [#allocation15]   ;;  %s587_s26 = sshll.u32 %s2879_s11, 4  ;;  %s588_s26 = int_to_ptr.hbm [resolvable:$true] %s587_s26 }
  0x53   : > { %s555_s22 = sshll.u32 %s2372_s27, 4  ;;  %s2943_s17 = smov 8   ;;  %s556_s22 = int_to_ptr.vmem [resolvable:$true] %s555_s22 }
  0x54   : > { %s2944_s21 = smov 128   ;;  %s2374_s27 = smov [#allocation21]  }
  0x55   : > { %s623_s5 = sshll.u32 %s2374_s27, 4  ;;  %s2945_s2 = sld [smem:[#allocation40_spill]]  ;;  %s624_s5 = int_to_ptr.vmem [resolvable:$true] %s623_s5 }
  0x56   : > { %s525_s14 = sshll.u32 %s2941_s4, 4  ;;  %s644_s18 = scalar_lea.vmem [#allocation4], %s2585_s29  ;;  %s526_s14 = int_to_ptr.hbm [resolvable:$true] %s525_s14 }
  0x57   : > { %s553_s13 = sshll.u32 %s2942_s7, 4  ;;  %s2946_s9 = sand.u32 1, %s2359_s20   ;;  %s554_s13 = int_to_ptr.hbm [resolvable:$true] %s553_s13 }
  0x58   : > { %1760 = dma.hbm_to_vmem [thread:$0]  (!%p2522_p6), %s526_s14, 128, %s528_s3, [#allocation11]  }
  0x59   : > { %1766 = dma.hbm_to_vmem [thread:$0]  (!%p2522_p6), %s554_s13, 512, %s556_s22, [#allocation14], %s2944_s21, %s2944_s21, %s2943_s17  }
  0x5a   : > { %s621_s14 = sshll.u32 %s2883_s15, 4  ;;  %s2373_s3 = smov [#allocation18]   ;;  %s622_s14 = int_to_ptr.hbm [resolvable:$true] %s621_s14 }
  0x5b   : > { %s589_s4 = sshll.u32 %s2373_s3, 4  ;;  %s648_s0 = scalar_lea.hbm %s2945_s2, %s2588_s16  ;;  %s590_s4 = int_to_ptr.vmem [resolvable:$true] %s589_s4 }
  0x5c   : > { %1772 = dma.hbm_to_vmem [thread:$0]  (!%p2522_p6), %s588_s26, 512, %s590_s4, [#allocation17], %s2944_s21, %s2944_s21, %s2943_s17  }
  0x5d   : > { %1778 = dma.hbm_to_vmem [thread:$0]  (!%p2522_p6), %s622_s14, 512, %s624_s5, [#allocation20], %s2944_s21, %s2944_s21, %s2943_s17  }
  0x5e   : > { %s652_s3 = sshll.u32 %s644_s18, 4  ;;  %s650_s7 = sshll.u32 %s648_s0, 4  ;;  %s653_s3 = int_to_ptr.vmem [resolvable:$true] %s652_s3  ;;  %s651_s7 = int_to_ptr.hbm [resolvable:$true] %s650_s7 }
  0x5f   : > { %s641_s4 = scalar_lea.sflag [#allocation5], %s2946_s9  ;;  %s2157_s26 = sshra.s32 %s651_s7, 4  ;;  %s2158_s26 = int_to_ptr.hbm [resolvable:$true] %s2157_s26 }
  0x60   : > { %s2159_s27 = scalar_lea.hbm %s2158_s26, 8  ;;  %s2164_s21 = scalar_lea.hbm %s2945_s2, 16 }
  0x61   : > { %p2160_p1 = scmp.ne.s32.totalorder %s2158_s26, %s2159_s27  ;;  %p2165_p6 = scmp.lt.s32.totalorder %s2158_s26, %s2945_s2 }
  0x62   : > { %p2166_p11 = scmp.lt.s32.totalorder %s2164_s21, %s2159_s27 }
  0x63   : > { %p2162_p8 = pnand %p2160_p1, %p2011_p9 }
  0x64   : > { %p2167_p13 = por %p2166_p11, %p2165_p6 }
  0x65   : > { %p2163_p10 = pneg %p2162_p8 }
  0x67   : > { %p2168_p0 = pnand %p2167_p13, %p2163_p10 }
  0x69   : > { %2171 = shalt.err (!%p2168_p0)
}
  0x6a   : > { %1782 = dma.hbm_to_vmem [thread:$0]  (!%p2590_p7), %s651_s7, 128, %s653_s3, %s641_s4  }
  0x6b   : > { %s2947_s22 = sld [smem:[#allocation42_spill]]  ;;  %s682_s18 = scalar_lea.vmem [#allocation9], %s2585_s29 }
  0x6c   : > { %s690_s1 = sshll.u32 %s682_s18, 4  ;;  %s691_s1 = int_to_ptr.vmem [resolvable:$true] %s690_s1 }
  0x71   : > { %s686_s0 = scalar_lea.hbm %s2947_s22, %s2588_s16  ;;  %s2194_s7 = scalar_lea.hbm %s2947_s22, 16 }
  0x72   : > { %s688_s17 = sshll.u32 %s686_s0, 4  ;;  %s689_s17 = int_to_ptr.hbm [resolvable:$true] %s688_s17 }
  0x73   : > { %s2187_s26 = sshra.s32 %s689_s17, 4  ;;  %s2188_s26 = int_to_ptr.hbm [resolvable:$true] %s2187_s26 }
  0x74   : > { %s2189_s27 = scalar_lea.hbm %s2188_s26, 8  ;;  %p2195_p10 = scmp.lt.s32.totalorder %s2188_s26, %s2947_s22 }
  0x75   : > { %p2190_p2 = scmp.ne.s32.totalorder %s2188_s26, %s2189_s27  ;;  %p2196_p6 = scmp.lt.s32.totalorder %s2194_s7, %s2189_s27 }
  0x77   : > { %p2192_p1 = pnand %p2190_p2, %p2011_p9  ;;  %p2197_p11 = por %p2196_p6, %p2195_p10 }
  0x79   : > { %p2193_p8 = pneg %p2192_p1 }
  0x7b   : > { %p2198_p13 = pnand %p2197_p11, %p2193_p8 }
  0x7d   : > { %2201 = shalt.err (!%p2198_p13)
}
  0x7e   : > { %1788 = dma.hbm_to_vmem [thread:$0]  (!%p2590_p7), %s689_s17, 128, %s691_s1, %s2600_s19  }
  0x7f   : > { %699 = sbr.rel (%p2510_p3) target bundleno = 1090 (0x442), region = 88  ;;  %s2683_s29 = sand.u32 (!%p2510_p3), 1, %s2355_s30  }
  0x80   : > { %s2686_s16 = sshll.u32 (!%p2510_p3), %s2683_s29, 3  ;;  %s702_s5 = scalar_lea.sflag (!%p2510_p3), [#allocation5], %s2683_s29 }
  0x81   : > { %s705_s9 = scalar_lea.vmem (!%p2510_p3), [#allocation4], %s2686_s16 }
  0x84   : > { %2318 = dma.done.wait (%p2566_p12), %s702_s5, 128  }
  0x85   : > { %2320 = vsyncadd (%p2566_p12), %s702_s5, 4294967168  ;;  %s711_s25 = sand.u32 1, %s2505_s24   ;;  %s715_s28 = scalar_lea.vmem [#allocation7], %s2686_s16 }
  0x86   : > { %s712_s19 = scalar_lea.sflag [#allocation8], %s711_s25 }
  0x87   : > { %2322 = dma.done.wait (%p2566_p12), %s712_s19, 256  }
  0x88   : > { %2324 = vsyncadd (%p2566_p12), %s712_s19, 4294967040  ;;  %s725_s13 = scalar_lea.vmem [#allocation9], %s2686_s16  ;;  %p2948_p3 = scmp.eq.s32.totalorder %s2505_s24, 0 }
  0x8a   : > { %2326 = dma.done.wait (%p2948_p3), [#allocation11], 256   ;;  %p2949_p7 = pmov %p2948_p3 }
  0x8b   : > { %p2950_p9 = pmov %p2948_p3 }
  0x8c   : > { %2328 = vsyncadd (%p2949_p7), [#allocation11], 4294967040 }
  0x8d   : > { %2330 = dma.done.wait (%p2950_p9), [#allocation14], 1024   ;;  %p2951_p0 = pmov %p2948_p3 }
  0x8f   : > { %2332 = vsyncadd (%p2951_p0), [#allocation14], 4294966272  ;;  %p2952_p2 = pmov %p2951_p0 }
  0x90   : > { %p2953_p1 = pmov %p2951_p0 }
  0x91   : > { %2334 = dma.done.wait (%p2952_p2), [#allocation17], 1024  }
  0x92   : > { %2336 = vsyncadd (%p2953_p1), [#allocation17], 4294966272  ;;  %p2954_p12 = pmov %p2951_p0 }
  0x93   : > { %p2955_p8 = pmov %p2951_p0 }
  0x94   : > { %2338 = dma.done.wait (%p2954_p12), [#allocation20], 1024  }
  0x95   : > { %2340 = vsyncadd (%p2955_p8), [#allocation20], 4294966272  ;;  %v913_v0 = vld [vmem:[#allocation16 + $0x18] sm:$0xff]  ;;  %v912_v2 = vld [vmem:[#allocation16 + $0x10] sm:$0xff]  ;;  %vm854_vm0 = vcmask 261120   ;;  %s2741_s14 = scalar_lea.vmem [#allocation23], %s2686_s16 }
  0x96   : > { %v944_v1 = vld [vmem:[#allocation18 + $0x18] sm:$0xff]  ;;  %933 = vmatpush.msra.mxu2 %v913_v0  ;;  %v943_v3 = vld [vmem:[#allocation18 + $0x10] sm:$0xff]  ;;  %v911_v4 = vld [vmem:[#allocation16 + $0x8] sm:$0xff]  ;;  %vm1008_vm1 = vcmask 64512   ;;  %s2375_s7 = smov 112   ;;  %s2376_s3 = smov 120  }
  0x97   : > { %961 = vmatpush.msra.mxu3 %v944_v1  ;;  %v942_v5 = vld [vmem:[#allocation18 + $0x8] sm:$0xff]  ;;  %v849_v6 = vld [vmem:[#allocation13 + $0x18] sm:$0xff]  ;;  %v848_v8 = vld [vmem:[#allocation13 + $0x10] sm:$0xff]  ;;  %s2377_s4 = smov 104   ;;  %s2956_s19 = sld [smem:[#allocation49_spill]]  ;;  %vm1151_vm2 = vcmask 130112  }
  0x98   : > { %v881_v7 = vld [vmem:[#allocation15 + $0x18] sm:$0xff]  ;;  %934 = vmatpush.msra.mxu2 %v912_v2  ;;  %870 = vmatpush.msra.mxu0 %v849_v6  ;;  %v910_v9 = vld [vmem:[#allocation16] sm:$0xff]  ;;  %v880_v11 = vld [vmem:[#allocation15 + $0x10] sm:$0xff]  ;;  %s2379_s23 = smov 24   ;;  %s2380_s0 = smov 16   ;;  %vm1231_vm3 = vcmask 195712  }
  0x99   : > { %962 = vmatpush.msra.mxu3 %v943_v3  ;;  %898 = vmatpush.msra.mxu1 %v881_v7  ;;  %v941_v10 = vld [vmem:[#allocation18] sm:$0xff]  ;;  %v842_v12 = vld [vmem:[%s715_s28] sm:$0xff]  ;;  %v847_v13 = vld [vmem:[#allocation13 + $0x8] sm:$0xff]  ;;  %s2768_s28 = scalar_lea.vmem [#allocation25], %s2686_s16  ;;  %vm1311_vm4 = vcmask 261312   ;;  %s2789_s1 = sshll.u32 %s2505_s24, 3 }
  0x9a   : > { %935 = vmatpush.msra.mxu2 %v911_v4  ;;  %871 = vmatpush.msra.mxu0 %v848_v8  ;;  %v879_v14 = vld [vmem:[#allocation15 + $0x8] sm:$0xff]  ;;  %v846_v15 = vld [vmem:[#allocation13] sm:$0xff]  ;;  %v1865_v18 = vld [vmem:[%s2874_s6] ss:$0 sm:$0xff]  ;;  %s2958_s27 = sld [smem:[#allocation52_spill]] }
  0x9b   : > { %963 = vmatpush.msra.mxu3 %v942_v5  ;;  %899 = vmatpush.msra.mxu1 %v880_v11  ;;  %v878_v16 = vld [vmem:[#allocation15] sm:$0xff]  ;;  %v1866_v19 = vld [vmem:[%s2876_s8] ss:$0 sm:$0xff]  ;;  %v845_v24 = vld [vmem:[#allocation12] sm:$0xff] }
  0x9c   : > { %936 = vmatpush.msra.mxu2 %v910_v9  ;;  %872 = vmatpush.msra.mxu0 %v847_v13  ;;  %v841_v17 = vld [vmem:[%s705_s9] sm:$0xff]  ;;  %v1867_v20 = vld [vmem:[%s2878_s10] ss:$0 sm:$0xff]  ;;  %v976_v40 = vld [vmem:[#allocation19 + $0x18] sm:$0xff] }
  0x9d   : > { %964 = vmatpush.msra.mxu3 %v941_v10  ;;  %1686 = vmatmul.msk.f32.vlgmr.msra.gmra.mxu2 %vm854_vm0, %v842_v12  ;;  %v1868_v21 = vld [vmem:[%s2880_s12] ss:$0 sm:$0xff]  ;;  %v974_v42 = vld [vmem:[#allocation19 + $0x8] sm:$0xff]  ;;  %v973_v43 = vld [vmem:[#allocation19] sm:$0xff] }
  0x9e   : > { %1687 = vmatmul.msk.f32.vlgmr.msra.gmra.mxu3 %vm854_vm0, %v842_v12  ;;  %900 = vmatpush.msra.mxu1 %v879_v14  ;;  %v844_v22 = vld [vmem:[#allocation10] sm:$0xff]  ;;  %v843_v44 = vld [vmem:[%s725_s13] sm:$0xff]  ;;  %s2378_s13 = smov 8  }
  0x9f   : > { %873 = vmatpush.msra.mxu0 %v846_v15  ;;  %v975_v41 = vld [vmem:[#allocation19 + $0x10] sm:$0xff] }
  0xa0   : > { %901 = vmatpush.msra.mxu1 %v878_v16  ;;  %1684 = vmatmul.msk.f32.vlgmr.msra.gmra.mxu0 %vm854_vm0, %v841_v17  ;;  %v1869_v53 = vld [vmem:[%s2956_s19] ss:$0 sm:$0xff]  ;;  %s1381_s21 = scalar_lea.hbm %s2958_s27, %s2789_s1 }
  0xa1   : > { %1685 = vmatmul.msk.f32.vlgmr.msra.gmra.mxu1 %vm854_vm0, %v841_v17  ;;  %996 = vmatpush.msrb.mxu0 %v976_v40 }
  0xa3   : > { %997 = vmatpush.msrb.mxu0 %v975_v41 }
  0xa5   : > { %998 = vmatpush.msrb.mxu0 %v974_v42 }
  0xa7   : > { %999 = vmatpush.msrb.mxu0 %v973_v43 }
  0xa8   : > { %1688 = vmatmul.msk.f32.vlgmr.msrb.gmra.mxu0 %vm854_vm0, %v843_v44 }
 0x11d   : > { %v875_v23 = vpop.f32.mrf.mxu0 }
 0x11e   : > { %v903_v25 = vpop.f32.mrf.mxu1  ;;  %v876_v26 = vadd.f32 %v1865_v18, %v875_v23 }
 0x11f   : > { %v904_v27 = vadd.f32 %v1866_v19, %v903_v25 }
 0x120   : > { %v938_v28 = vpop.f32.mrf.mxu2  ;;  %v906_v30 = vmul.f32 %v876_v26, %v844_v22 }
 0x121   : > { %v966_v29 = vpop.f32.mrf.mxu3  ;;  %v907_v31 = vmul.f32 %v904_v27, %v845_v24  ;;  %v939_v32 = vadd.f32 %v1867_v20, %v938_v28 }
 0x122   : > { %v967_v33 = vadd.f32 %v1868_v21, %v966_v29 }
 0x123   : > { %v908_v34 = vadd.f32 %v907_v31, %v906_v30  ;;  %v969_v35 = vmul.f32 %v939_v32, %v844_v22 }
 0x124   : > { %v970_v36 = vmul.f32 %v967_v33, %v845_v24 }
 0x125   : > { %909 = vst.msk [vmem:[#allocation2] sm:$0xff] %vm854_vm0, %v908_v34  ;;  %v1001_v54 = vpop.f32.mrf.mxu0 }
 0x126   : > { %v971_v37 = vadd.f32 %v970_v36, %v969_v35  ;;  %v1002_v55 = vadd.f32 %v1869_v53, %v1001_v54  ;;  %v1314_v53 = vld [vmem:[#allocation21] sm:$0xff] }
 0x128   : > { %972 = vst.msk [vmem:[%s2741_s14] sm:$0xff] %vm854_vm0, %v971_v37 }
 0x129   : > { %1004 = vst.msk [vmem:[%s2768_s28] sm:$0xff] %vm854_vm0, %v1002_v55 }
 0x12c   : > { %v1153_v38 = vld [vmem:[#allocation2] sm:$0xff] }
 0x12d   : > { %1157 = vrot.lane.b32.xlu2 %v1153_v38, %s2375_s7 }
 0x12f   : > { %v1154_v39 = vld [vmem:[%s2741_s14] sm:$0xff] }
 0x130   : > { %1160 = vrot.lane.b32.xlu1 %v1154_v39, %s2375_s7  ;;  %1080 = vrot.lane.b32.xlu0 %v1154_v39, %s2376_s3  ;;  %v1007_v56 = vld [vmem:[%s2768_s28] sm:$0xff] }
 0x131   : > { %1689 = vmatpush.xpose.msk.msrb.mxu1 %vm1008_vm1, %v1154_v39  ;;  %1062 = vmatpush.msrb.mxu2 %v1007_v56 }
 0x134   : > { %1690 = vmatmul.msk.f32.vlgmr.msrb.gmra.mxu1 %vm1008_vm1, %v1153_v38 }
 0x135   : > { %1237 = vrot.lane.b32.xlu2 %v1153_v38, %s2377_s4 }
 0x138   : > { %1240 = vrot.lane.b32.xlu1 %v1154_v39, %s2377_s4  ;;  %1077 = vrot.lane.b32.xlu0 %v1153_v38, %s2376_s3 }
 0x187   : > { %v1158_v47 = vpop.permute.xlu2 %1157 }
 0x18f   : > { %v1238_v51 = vpop.permute.xlu2 %1237 }
 0x1a2   : > { %v1161_v45 = vpop.permute.xlu1 %1160  ;;  %v1081_v46 = vpop.permute.xlu0 %1080 }
 0x1a3   : > { %1692 = vmatpush.xpose.msk.msrb.mxu3 %vm1008_vm1, %v1081_v46  ;;  %1695 = vmatpush.xpose.msk.msra.mxu1 %vm1008_vm1, %v1161_v45 }
 0x1a6   : > { %1696 = vmatmul.msk.f32.vlgmr.msra.gmra.mxu1 %vm1008_vm1, %v1158_v47 }
 0x1aa   : > { %v1241_v48 = vpop.permute.xlu1 %1240  ;;  %v1078_v49 = vpop.permute.xlu0 %1077 }
 0x1ab   : > { %1693 = vmatmul.msk.f32.vlgmr.msrb.gmra.mxu3 %vm1008_vm1, %v1078_v49 }
 0x1ac   : > { %1698 = vmatpush.xpose.msk.msra.mxu3 %vm1008_vm1, %v1241_v48 }
 0x1b1   : > { %v1032_v50 = vpop.f32.mrf.mxu1 }
 0x1b2   : > { %v1035_v52 = vsel %vm1008_vm1, %v1032_v50, -inf }
 0x1b3   : > { %1036 = vmax.xlane.f32.xlu0 %v1035_v52  ;;  %1699 = vmatmul.msk.f32.vlgmr.msra.gmra.mxu3 %vm1008_vm1, %v1238_v51  ;;  %v1316_v51 = vld [vmem:[#allocation21 + $0x10] sm:$0xff]  ;;  %v1315_v52 = vld [vmem:[#allocation21 + $0x8] sm:$0xff] }
 0x1c7   : > { %1116 = vrot.lane.b32.xlu0 %v1007_v56, %s2376_s3  ;;  %s1385_s3 = sshll.u32 %s1381_s21, 4  ;;  %s1386_s3 = int_to_ptr.hbm [resolvable:$true] %s1385_s3 }
 0x1c8   : > { %s2231_s5 = sshra.s32 %s1386_s3, 4  ;;  %s2232_s5 = int_to_ptr.hbm [resolvable:$true] %s2231_s5 }
 0x1c9   : > { %s2233_s9 = scalar_lea.hbm %s2232_s5, 8  ;;  %p2238_p13 = scmp.lt.s32.totalorder %s2232_s5, %s2958_s27 }
 0x1ca   : > { %p2234_p10 = scmp.ne.s32.totalorder %s2232_s5, %s2233_s9 }
 0x1cc   : > { %p2235_p6 = pnand %p2234_p10, %p2575_p5 }
 0x1ce   : > { %p2236_p11 = pneg %p2235_p6 }
 0x223   : > { %v1183_v57 = vpop.f32.mrf.mxu1 }
 0x224   : > { %v1186_v58 = vsel %vm1008_vm1, %v1183_v57, -inf }
 0x225   : > { %1187 = vmax.xlane.f32.xlu2 %v1186_v58 }
 0x226   : > { %v1037_v59 = vpop.xlane.xlu0 %1036 }
 0x227   : > { %v1038_v60 = vsub.f32 %v1032_v50, %v1037_v59  ;;  %v1317_v50 = vld [vmem:[#allocation21 + $0x18] sm:$0xff] }
 0x228   : > { %1337 = vmatpush.msrb.mxu1 %v1317_v50 }
 0x229   : > { %v1039_v61 = vmul.f32 1.442695, %v1038_v60 }
 0x22a   : > { %1338 = vmatpush.msrb.mxu1 %v1316_v51 }
 0x22b   : > { %1871 = vpow2.f32 %v1039_v61 }
 0x22c   : > { %1339 = vmatpush.msrb.mxu1 %v1315_v52 }
 0x22e   : > { %v1103_v62 = vpop.f32.mrf.mxu3  ;;  %1340 = vmatpush.msrb.mxu1 %v1314_v53 }
 0x22f   : > { %v1106_v63 = vsel %vm1008_vm1, %v1103_v62, -inf }
 0x230   : > { %1107 = vmax.xlane.f32.xlu1 %v1106_v63 }
 0x231   : > { %v1872_v0 = vpop.eup %1871 }
 0x232   : > { %1691 = vmatmul.msk.f32.vlgmr.msrb.gmra.mxu2 %vm1008_vm1, %v1872_v0  ;;  %v1041_v20 = vsel %vm1008_vm1, %v1872_v0, 0.0 }
 0x236   : > { %v1263_v1 = vpop.f32.mrf.mxu3 }
 0x237   : > { %v1266_v2 = vsel %vm1008_vm1, %v1263_v1, -inf }
 0x238   : > { %1267 = vmax.xlane.f32.xlu2 %v1266_v2 }
 0x239   : > { %v1117_v3 = vpop.permute.xlu0 %1116 }
 0x23a   : > { %1137 = vmatpush.msra.mxu0 %v1117_v3 }
 0x249   : > { %1196 = vrot.lane.b32.xlu1 %v1007_v56, %s2375_s7  ;;  %s1383_s7 = sshll.u32 %s2741_s14, 4  ;;  %s1384_s7 = int_to_ptr.vmem [resolvable:$true] %s1383_s7 }
 0x250   : > { %1276 = vrot.lane.b32.xlu2 %v1007_v56, %s2377_s4  ;;  %s2799_s4 = scalar_lea.sflag [#allocation24], %s711_s25 }
 0x298   : > { %v1188_v4 = vpop.xlane.xlu2 %1187 }
 0x299   : > { %v1189_v5 = vsub.f32 %v1183_v57, %v1188_v4 }
 0x29b   : > { %v1190_v6 = vmul.f32 1.442695, %v1189_v5 }
 0x29d   : > { %1873 = vpow2.f32 %v1190_v6 }
 0x2a3   : > { %v1874_v7 = vpop.eup %1873  ;;  %v1108_v8 = vpop.xlane.xlu1 %1107 }
 0x2a4   : > { %v1109_v9 = vsub.f32 %v1103_v62, %v1108_v8  ;;  %v1192_v10 = vsel %vm1008_vm1, %v1874_v7, 0.0 }
 0x2a5   : > { %1193 = vadd.xlane.f32.xlu1 %v1192_v10 }
 0x2a6   : > { %v1110_v11 = vmul.f32 1.442695, %v1109_v9 }
 0x2a8   : > { %1875 = vpow2.f32 %v1110_v11 }
 0x2ab   : > { %v1268_v12 = vpop.xlane.xlu2 %1267 }
 0x2ac   : > { %v1269_v13 = vsub.f32 %v1263_v1, %v1268_v12 }
 0x2ae   : > { %v1876_v14 = vpop.eup %1875  ;;  %v1270_v15 = vmul.f32 1.442695, %v1269_v13 }
 0x2af   : > { %1694 = vmatmul.msk.f32.vlgmr.msra.gmra.mxu0 %vm1008_vm1, %v1876_v14  ;;  %v1112_v16 = vsel %vm1008_vm1, %v1876_v14, 0.0 }
 0x2b0   : > { %1877 = vpow2.f32 %v1270_v15  ;;  %1113 = vadd.xlane.f32.xlu0 %v1112_v16 }
 0x2b3   : > { %v1277_v17 = vpop.permute.xlu2 %1276 }
 0x2b4   : > { %1297 = vmatpush.msrb.mxu0 %v1277_v17 }
 0x2b5   : > { %v1064_v41 = vpop.f32.mrf.mxu2 }
 0x2b6   : > { %v1878_v18 = vpop.eup %1877 }
 0x2b7   : > { %1700 = vmatmul.msk.f32.vlgmr.msrb.gmra.mxu0 %vm1008_vm1, %v1878_v18  ;;  %v1272_v19 = vsel %vm1008_vm1, %v1878_v18, 0.0 }
 0x2b8   : > { %1273 = vadd.xlane.f32.xlu2 %v1272_v19  ;;  %1042 = vadd.xlane.f32.xlu0 %v1041_v20 }
 0x2bb   : > { %v1197_v21 = vpop.permute.xlu1 %1196 }
 0x2bc   : > { %1217 = vmatpush.msra.mxu2 %v1197_v21 }
 0x2bd   : > { %1697 = vmatmul.msk.f32.vlgmr.msra.gmra.mxu2 %vm1008_vm1, %v1874_v7 }
 0x318   : > { %v1194_v24 = vpop.xlane.xlu1 %1193 }
 0x323   : > { %v1114_v22 = vpop.xlane.xlu0 %1113 }
 0x324   : > { %1879 = vrcp.f32 %v1114_v22 }
 0x32a   : > { %v1880_v23 = vpop.eup %1879 }
 0x32b   : > { %v1143_v25 = vmul.f32 %v1880_v23, %v1114_v22  ;;  %v1274_v26 = vpop.xlane.xlu2 %1273  ;;  %v1043_v27 = vpop.xlane.xlu0 %1042 }
 0x32c   : > { %1881 = vrcp.f32 %v1274_v26  ;;  %v1139_v29 = vpop.f32.mrf.mxu0 }
 0x32d   : > { %v1144_v28 = vsub.f32 2.0, %v1143_v25  ;;  %1883 = vrcp.f32 %v1043_v27 }
 0x32e   : > { %1885 = vrcp.f32 %v1194_v24 }
 0x32f   : > { %v1145_v30 = vmul.f32 %v1880_v23, %v1144_v28 }
 0x331   : > { %v1146_v31 = vmul.f32 %v1145_v30, %v1139_v29 }
 0x332   : > { %v1882_v32 = vpop.eup %1881 }
 0x333   : > { %v1884_v33 = vpop.eup %1883  ;;  %v1303_v34 = vmul.f32 %v1882_v32, %v1274_v26  ;;  %1148 = vrot.lane.b32.xlu1 %v1146_v31, %s2378_s13 }
 0x334   : > { %v1886_v35 = vpop.eup %1885  ;;  %v1068_v36 = vmul.f32 %v1884_v33, %v1043_v27  ;;  %v1299_v43 = vpop.f32.mrf.mxu0 }
 0x335   : > { %v1304_v37 = vsub.f32 2.0, %v1303_v34  ;;  %v1223_v39 = vmul.f32 %v1886_v35, %v1194_v24 }
 0x336   : > { %v1069_v38 = vsub.f32 2.0, %v1068_v36 }
 0x337   : > { %v1305_v40 = vmul.f32 %v1882_v32, %v1304_v37  ;;  %v1224_v46 = vsub.f32 2.0, %v1223_v39 }
 0x338   : > { %v1070_v42 = vmul.f32 %v1884_v33, %v1069_v38 }
 0x339   : > { %v1306_v44 = vmul.f32 %v1305_v40, %v1299_v43  ;;  %v1225_v47 = vmul.f32 %v1886_v35, %v1224_v46 }
 0x33a   : > { %v1071_v45 = vmul.f32 %v1070_v42, %v1064_v41 }
 0x33b   : > { %1308 = vrot.lane.b32.xlu2 %v1306_v44, %s2379_s23  ;;  %s2237_s23 = scalar_lea.hbm %s2958_s27, 16 }
 0x33c   : > { %1072 = vst.msk [vmem:[#allocation3] sm:$0xff] %vm1008_vm1, %v1071_v45  ;;  %p2239_p3 = scmp.lt.s32.totalorder %s2237_s23, %s2233_s9 }
 0x33e   : > { %p2240_p7 = por %p2239_p3, %p2238_p13 }
 0x340   : > { %v1219_v48 = vpop.f32.mrf.mxu2  ;;  %p2241_p9 = pnand %p2240_p7, %p2236_p11 }
 0x341   : > { %v1226_v49 = vmul.f32 %v1225_v47, %v1219_v48 }
 0x343   : > { %1228 = vrot.lane.b32.xlu0 %v1226_v49, %s2380_s0 }
 0x395   : > { %v1309_v56 = vpop.permute.xlu2 %1308 }
 0x3a5   : > { %v1149_v54 = vpop.permute.xlu1 %1148 }
 0x3a6   : > { %1152 = vst.msk [vmem:[#allocation3] sm:$0xff] %vm1151_vm2, %v1149_v54 }
 0x3b5   : > { %v1229_v55 = vpop.permute.xlu0 %1228 }
 0x3b6   : > { %1232 = vst.msk [vmem:[#allocation3] sm:$0xff] %vm1231_vm3, %v1229_v55 }
 0x3b7   : > { %1312 = vst.msk [vmem:[#allocation3] sm:$0xff] %vm1311_vm4, %v1309_v56 }
 0x3be   : > { %v1313_v57 = vld [vmem:[#allocation3] sm:$0xff] }
 0x3bf   : > { %1701 = vmatmul.msk.f32.vlgmr.msrb.gmra.mxu1 %vm854_vm0, %v1313_v57 }
 0x3c0   : > { %2244 = shalt.err (!%p2241_p9)
}
 0x3c1   : > { %1749 = dma.vmem_to_hbm [thread:$0]  (%p2575_p5), %s1384_s7, 128, %s1386_s3, %s2799_s4  }
 0x3c2   : > { %s2959_s17 = sld [smem:[#allocation53_spill]]  ;;  %s1397_s21 = sshll.u32 %s2768_s28, 4  ;;  %s1398_s21 = int_to_ptr.vmem [resolvable:$true] %s1397_s21 }
 0x3c8   : > { %s1395_s26 = scalar_lea.hbm %s2959_s17, %s2789_s1  ;;  %s2265_s14 = scalar_lea.hbm %s2959_s17, 16 }
 0x3c9   : > { %s1399_s19 = sshll.u32 %s1395_s26, 4  ;;  %s1400_s19 = int_to_ptr.hbm [resolvable:$true] %s1399_s19 }
 0x3ca   : > { %s2259_s5 = sshra.s32 %s1400_s19, 4  ;;  %s2260_s5 = int_to_ptr.hbm [resolvable:$true] %s2259_s5 }
 0x3cb   : > { %s2261_s9 = scalar_lea.hbm %s2260_s5, 8  ;;  %p2266_p12 = scmp.lt.s32.totalorder %s2260_s5, %s2959_s17 }
 0x3cc   : > { %p2262_p0 = scmp.ne.s32.totalorder %s2260_s5, %s2261_s9  ;;  %p2267_p8 = scmp.lt.s32.totalorder %s2265_s14, %s2261_s9 }
 0x3ce   : > { %p2263_p2 = pnand %p2262_p0, %p2575_p5  ;;  %p2268_p10 = por %p2267_p8, %p2266_p12 }
 0x3d0   : > { %p2264_p1 = pneg %p2263_p2 }
 0x3d2   : > { %p2269_p6 = pnand %p2268_p10, %p2264_p1 }
 0x3d4   : > { %2272 = shalt.err (!%p2269_p6)
}
 0x3d5   : > { %1750 = dma.vmem_to_hbm [thread:$0]  (%p2575_p5), %s1398_s21, 128, %s1400_s19, %s2799_s4  }
 0x3d6   : > { %s2960_s24 = sld [smem:[#allocation51_spill]]  ;;  %s826_s5 = scalar_lea.vmem [#allocation22], %s2686_s16 }
 0x3d7   : > { %s2961_s23 = sld [smem:[#allocation50_spill]]  ;;  %s1369_s9 = sshll.u32 %s826_s5, 4  ;;  %s1370_s9 = int_to_ptr.vmem [resolvable:$true] %s1369_s9 }
 0x3d8   : > { %s1347_s7 = scalar_lea.sflag [#allocation6], %s2683_s29 }
 0x3dc   : > { %s1367_s25 = scalar_lea.hbm %s2960_s24, %s2789_s1  ;;  %s2293_s16 = scalar_lea.hbm %s2960_s24, 16 }
 0x3dd   : > { %v1870_v58 = vld [vmem:[%s2961_s23] ss:$0 sm:$0xff]  ;;  %s1371_s14 = sshll.u32 %s1367_s25, 4  ;;  %s1372_s14 = int_to_ptr.hbm [resolvable:$true] %s1371_s14 }
 0x3de   : > { %s2287_s4 = sshra.s32 %s1372_s14, 4  ;;  %s2288_s4 = int_to_ptr.hbm [resolvable:$true] %s2287_s4 }
 0x3df   : > { %s2289_s21 = scalar_lea.hbm %s2288_s4, 8  ;;  %p2294_p7 = scmp.lt.s32.totalorder %s2288_s4, %s2960_s24 }
 0x3e0   : > { %p2290_p11 = scmp.ne.s32.totalorder %s2288_s4, %s2289_s21  ;;  %p2295_p9 = scmp.lt.s32.totalorder %s2293_s16, %s2289_s21 }
 0x3e2   : > { %p2291_p13 = pnand %p2290_p11, %p2575_p5  ;;  %p2296_p0 = por %p2295_p9, %p2294_p7 }
 0x3e4   : > { %p2292_p3 = pneg %p2291_p13 }
 0x3e6   : > { %p2297_p2 = pnand %p2296_p0, %p2292_p3 }
 0x43c   : > { %v1342_v59 = vpop.f32.mrf.mxu1 }
 0x43d   : > { %v1343_v60 = vadd.f32 %v1870_v58, %v1342_v59 }
 0x43f   : > { %1345 = vst.msk [vmem:[%s826_s5] sm:$0xff] %vm854_vm0, %v1343_v60 }
 0x440   : > { %2300 = shalt.err (!%p2297_p2)
}
 0x441   : > { %1748 = dma.vmem_to_hbm [thread:$0]  (%p2575_p5), %s1370_s9, 128, %s1372_s14, %s1347_s7  }
 0x442 PF: > { %s2962_s29 = sld [smem:[#allocation34_spill]] }
 0x443   : > { %s2964_s25 = sld [smem:[#allocation35_spill]] }
 0x448   : > { %s1411_s26 = sand.u32 1, %s2962_s29  }
 0x449   : > { %p2965_p1 = scmp.ge.s32.totalorder %s2964_s25, 2  ;;  %s1412_s13 = scalar_lea.sflag [#allocation6], %s1411_s26 }
 0x44b   : > { %p1790_p12 = pnand %p2965_p1, %p2579_p4 }
 0x44d   : > { %p1791_p8 = pneg %p1790_p12 }
 0x44f   : > { %2342 = dma.done.wait (%p1791_p8), %s1412_s13, 128  }
 0x450   : > { %2344 = vsyncadd (%p1791_p8), %s1412_s13, 4294967168  ;;  %s2966_s23 = sadd.s32 4294967294, %s2964_s25  }
 0x451   : > { %s1421_s5 = sand.u32 1, %s2966_s23  }
 0x452   : > { %s1422_s4 = scalar_lea.sflag [#allocation24], %s1421_s5 }
 0x453   : > { %2346 = dma.done.wait (%p1791_p8), %s1422_s4, 256  }
 0x454   : > { %2348 = vsyncadd (%p1791_p8), %s1422_s4, 4294967040  ;;  %s2967_s21 = sld [smem:[#allocation36_spill]]  ;;  %s2969_s0 = smov %s2355_s30 }
 0x455   : > { %s2968_s18 = sld [smem:[#allocation37_spill]]  ;;  %s2970_s30 = smov %s2359_s20 }
 0x45a   : > { %p43_p5 = scmp.ge.s32.totalorder %s2967_s21, 4  }
 0x45b   : > { %s2971_s20 = smov %s2968_s18 }
 0x45c   :  { %45 = sbr.rel (!%p43_p5) target bundleno = 28 (0x1c), region = 221 }
 0x461   :  { %1438 = vsyncpa [#allocation5], 1 }
 0x462   :  { %1440 = vsyncpa [#allocation5 + $0x1], 1 }
 0x463   :  { %1441 = vsyncpa [#allocation8], 1 }
 0x464   :  { %1443 = vsyncpa [#allocation8 + $0x1], 1 }
 0x465   :  { %1444 = vsyncpa [#allocation11], 1 }
 0x466   :  { %1445 = vsyncpa [#allocation14], 1 }
 0x467   :  { %1446 = vsyncpa [#allocation17], 1 }
 0x468   :  { %1447 = vsyncpa [#allocation20], 1 }
 0x469   :  { %1448 = vsyncpa [#allocation6], 1 }
 0x46a   :  { %1450 = vsyncpa [#allocation6 + $0x1], 1 }
 0x46b   :  { %1451 = vsyncpa [#allocation24], 1 }
 0x46c   :  { %1453 = vsyncpa [#allocation24 + $0x1], 1 }

</bundles_post_ra>
